<compile_context>
chip_gen: v6e
topology: v6e:2x2x1
jax: 0.10.0
libtpu: 0.0.40
codegen_flags: <defaults>
</compile_context>

<pallas_src>
import math

import jax
import jax.numpy as jnp
from jax import lax
from jax.experimental import pallas as pl
from jax.experimental.pallas import tpu as pltpu

_ALPHA = 1e-7     # SILogLoss log epsilon
_EPS = 1e-10      # GradL1Loss atan denominator epsilon
_BETA = 0.15      # SILogLoss beta

_BAND = 8         # rows per inner sub-tile (one f32 vreg of sublanes)
_MAX_STRIPE = 256 # target stripe height (rows) for the row-stripe grid axis


def _cdiv(a, b):
    return -(-a // b)


def _atan_f32(x):
    """Cephes-style float32 arctan from ops guaranteed to lower in Mosaic.

    Replaces torch.atan inside the kernel; range-reduction reciprocals use the
    EUP approx reciprocal (the 0.1-weight GradL1 term tolerates it)."""
    ax = jnp.abs(x)
    t3p8 = jnp.float32(2.414213562373095)   # tan(3*pi/8)
    tp8 = jnp.float32(0.4142135623730951)   # tan(pi/8)
    big = ax > t3p8
    mid = jnp.logical_and(jnp.logical_not(big), ax > tp8)
    inv_ax = pl.reciprocal(ax + jnp.float32(_EPS), approx=True)
    inv_ax1 = pl.reciprocal(ax + 1.0, approx=True)
    xr = jnp.where(big, -inv_ax, jnp.where(mid, (ax - 1.0) * inv_ax1, ax))
    y0 = jnp.where(big, jnp.float32(math.pi / 2),
                   jnp.where(mid, jnp.float32(math.pi / 4), jnp.float32(0.0)))
    z = xr * xr
    p = ((jnp.float32(8.05374449538e-2) * z - jnp.float32(1.38776856032e-1)) * z
         + jnp.float32(1.99777106478e-1)) * z - jnp.float32(3.33329491539e-1)
    y = y0 + p * z * xr + xr
    return jnp.where(x < 0, -y, y)


def _loss_sums_kernel(pred_ref, gt_ref, mask_ref, halo_p_ref, halo_t_ref, out_ref):
    """One (image, row-stripe) per grid step.

    pred/gt/mask blocks: (1, TR, W) f32 (mask packed {0,1,2}).
    halo blocks: (1, 8, W) f32 — the 8 rows directly above the stripe.
    out block: (1, 1, 8, 128) f32 — six sums in lanes 0..5 of every row:
      [sum g, sum g^2, count, sum|dmag|, sum|dang|, count_grad]."""
    tr = pred_ref.shape[1]
    w = pred_ref.shape[2]
    n_bands = tr // _BAND

    # Hoisted once per grid step (reused by every band).
    row0 = lax.broadcasted_iota(jnp.int32, (_BAND, w), 0) == 0

    def fold(x):
        # (8, W) -> (8, 128): sum the 128-lane chunks (static aligned slices,
        # a handful of vreg adds); keeps the running sums in 6 vregs total.
        acc = x[:, 0:128]
        for c in range(1, w // 128):
            acc = acc + x[:, c * 128:(c + 1) * 128]
        return acc

    def band_step(r0, prev_p, prev_t, accs):
        a_g, a_g2, a_cnt, a_mag, a_ang, a_cntg = accs
        p = pred_ref[0, pl.ds(r0, _BAND), :]
        t = gt_ref[0, pl.ds(r0, _BAND), :]
        mk = mask_ref[0, pl.ds(r0, _BAND), :]       # packed f32 {0, 1, 2}
        mf = jnp.minimum(mk, 1.0)                   # SILog mask
        mgf = mk - mf                               # gradient mask (mask & border)

        # ---- SILog partials: g = log(p + a) - log(t + a) over the mask -----
        g = (jnp.log(p + _ALPHA) - jnp.log(t + _ALPHA)) * mf
        a_g = a_g + fold(g)
        a_g2 = a_g2 + fold(g * g)
        a_cnt = a_cnt + fold(mf)

        # ---- GradL1 partials: backward diffs; the first row of the band
        # takes its "row above" from the previous band / stripe halo.  The
        # wrapped first column of dx is excluded by the border-folded mask.
        shift_p = jnp.where(row0, pltpu.roll(prev_p, shift=1, axis=0),
                            pltpu.roll(p, shift=1, axis=0))
        shift_t = jnp.where(row0, pltpu.roll(prev_t, shift=1, axis=0),
                            pltpu.roll(t, shift=1, axis=0))
        dx_p = p - pltpu.roll(p, shift=1, axis=1)
        dx_t = t - pltpu.roll(t, shift=1, axis=1)
        dy_p = p - shift_p
        dy_t = t - shift_t

        mag_p = dx_p * dx_p + dy_p * dy_p
        mag_t = dx_t * dx_t + dy_t * dy_t
        ang_p = _atan_f32(dy_p * pl.reciprocal(dx_p + _EPS, approx=True))
        ang_t = _atan_f32(dy_t * pl.reciprocal(dx_t + _EPS, approx=True))

        a_mag = a_mag + fold(jnp.abs(mag_p - mag_t) * mgf)
        a_ang = a_ang + fold(jnp.abs(ang_p - ang_t) * mgf)
        a_cntg = a_cntg + fold(mgf)
        return (a_g, a_g2, a_cnt, a_mag, a_ang, a_cntg)

    zero = jnp.zeros((_BAND, 128), jnp.float32)
    accs = (zero, zero, zero, zero, zero, zero)

    # Band 0: the row above comes from the halo block (previous stripe's last
    # 8 rows; for the first stripe its contents are arbitrary but finite, and
    # image row 0 has grad-mask == 0, so the value never contributes).
    accs = band_step(0, halo_p_ref[0], halo_t_ref[0], accs)

    def body(i, accs):
        r0 = pl.multiple_of(i * _BAND, _BAND)
        rp = pl.multiple_of(r0 - _BAND, _BAND)
        prev_p = pred_ref[0, pl.ds(rp, _BAND), :]
        prev_t = gt_ref[0, pl.ds(rp, _BAND), :]
        return band_step(r0, prev_p, prev_t, accs)

    accs = lax.fori_loop(1, n_bands, body, accs)

    # Pack the six reduced sums into one lane-dense (8, 128) vreg -> one store.
    lane = lax.broadcasted_iota(jnp.int32, (_BAND, 128), 1)
    out = jnp.zeros((_BAND, 128), jnp.float32)
    for idx, a in enumerate(accs):
        out = out + jnp.where(lane == idx, jnp.sum(a), 0.0)
    out_ref[0, 0] = out


def _loss_sums(pred, gt, mask_packed, stripe_rows):
    """pred, gt, mask_packed: (N, H, W) f32, H % stripe_rows == 0, W % 128 == 0.

    Returns a (6,) f32 vector:
      [sum g, sum g^2, count, sum|dmag|, sum|dang|, count_grad]."""
    n, h, w = pred.shape
    tr = stripe_rows
    s = h // tr
    blocks_per_stripe = tr // _BAND

    img_spec = pl.BlockSpec((1, tr, w), lambda b, st: (b, st, 0))
    halo_spec = pl.BlockSpec(
        (1, _BAND, w),
        lambda b, st: (b, jnp.maximum(st * blocks_per_stripe - 1, 0), 0))
    out_spec = pl.BlockSpec((1, 1, _BAND, 128), lambda b, st: (b, st, 0, 0))

    partials = pl.pallas_call(
        _loss_sums_kernel,
        out_shape=jax.ShapeDtypeStruct((n, s, _BAND, 128), jnp.float32),
        grid_spec=pltpu.PrefetchScalarGridSpec(
            num_scalar_prefetch=0,
            grid=(n, s),
            in_specs=[img_spec, img_spec, img_spec, halo_spec, halo_spec],
            out_specs=out_spec,
        ),
        compiler_params=pltpu.CompilerParams(
            dimension_semantics=("parallel", "parallel"),
            vmem_limit_bytes=32 * 1024 * 1024),
    )(pred, gt, mask_packed, pred, gt)
    # Tiny final reduction in plain JAX.
    return jnp.sum(partials[:, :, 0, :6], axis=(0, 1))


def _choose_stripe(h):
    """Pick (stripe_rows, num_stripes) so stripe_rows <= ~_MAX_STRIPE and the
    padded height stripe_rows * num_stripes adds at most (num_stripes-1)*8 rows."""
    blocks = _cdiv(max(h, _BAND), _BAND)
    num_stripes = _cdiv(blocks, _MAX_STRIPE // _BAND)
    tr_blocks = _cdiv(blocks, num_stripes)
    return tr_blocks * _BAND, num_stripes


def _pack_masks(mask_bool):
    """Fold the gradient border (row>=1 & col>=1) into the mask on the host
    side so the kernel never touches iota/compare/select per pixel.
    Packed values: 0 = invalid, 1 = SILog-valid, 2 = SILog + grad valid."""
    _, h, w = mask_bool.shape
    border = (jnp.arange(h) >= 1)[:, None] & (jnp.arange(w) >= 1)[None, :]
    # TODO(synk): if bit-matching a ZoeDepth-canonical GradL1 grad_mask
    #             (mask & left-neighbour mask) is required, change `mg` here —
    #             it is a wrapper-only change, the kernel is unaffected.
    mg = mask_bool & border[None]
    return mask_bool.astype(jnp.float32) + mg.astype(jnp.float32)


def _interp_matrix(out_size, in_size, dtype=jnp.float32):
    """Row-interpolation matrix for align_corners=True bilinear resize."""
    if out_size > 1:
        src = jnp.linspace(0.0, in_size - 1.0, out_size, dtype=jnp.float32)
    else:
        src = jnp.zeros((1,), jnp.float32)
    i0 = jnp.clip(jnp.floor(src).astype(jnp.int32), 0, max(in_size - 2, 0))
    i1 = jnp.clip(i0 + 1, 0, in_size - 1)
    w1 = src - i0.astype(jnp.float32)
    w0 = 1.0 - w1
    return (jax.nn.one_hot(i0, in_size, dtype=dtype) * w0[:, None]
            + jax.nn.one_hot(i1, in_size, dtype=dtype) * w1[:, None])


def _bilinear_align_corners(x, out_h, out_w):
    """F.interpolate(..., mode='bilinear', align_corners=True) for NCHW,
    expressed as two dense matmuls (MXU) instead of gathers."""
    _, _, h, w = x.shape
    if h == out_h and w == out_w:
        return x
    x = x.astype(jnp.float32)
    a_h = _interp_matrix(out_h, h)          # (out_h, H)
    a_w = _interp_matrix(out_w, w)          # (out_w, W)
    tmp = jnp.einsum('oh,nchw->ncow', a_h, x)
    return jnp.einsum('pw,ncow->ncop', a_w, tmp)


def _pad_to(x, h_pad, w_pad):
    _, h, w = x.shape
    if h == h_pad and w == w_pad:
        return x
    return jnp.pad(x, ((0, 0), (0, h_pad - h), (0, w_pad - w)))


class Config:
    def __init__(self, w_si=1.0, w_grad=0.1):
        self.w_si = w_si
        self.w_grad = w_grad


def zoe_depth_loss(pred_depths, depths_gt, mask, config):
    """JAX/Pallas equivalent of ZoeDepthLoss.forward.

    pred_depths: (N, 1, Hp, Wp); depths_gt: (N, 1, H, W) or (N, H, W);
    mask: same spatial shape as depths_gt (bool / {0,1}).
    Returns (total_loss, losses_dict, pred_interpolated)."""
    if depths_gt.ndim == 3:
        depths_gt = depths_gt[:, None]
    if mask.ndim == 3:
        mask = mask[:, None]

    # SILogLoss(interpolate=True): resize pred to gt resolution if needed.
    if pred_depths.shape[-2:] != depths_gt.shape[-2:]:
        pred = _bilinear_align_corners(
            pred_depths, depths_gt.shape[-2], depths_gt.shape[-1])
    else:
        pred = pred_depths

    n, _, h, w = pred.shape   # channel == 1
    p = pred.reshape(n, h, w).astype(jnp.float32)
    t = depths_gt.reshape(n, h, w).astype(jnp.float32)
    m = mask.reshape(n, h, w).astype(bool)

    packed = _pack_masks(m)

    # Zero-pad to (8, 128)-aligned, stripe-divisible tiles; padded pixels have
    # mask == 0 so they never contribute.  No-op for aligned resolutions.
    tr, s = _choose_stripe(h)
    h_pad = tr * s
    w_pad = _cdiv(w, 128) * 128
    sums = _loss_sums(_pad_to(p, h_pad, w_pad),
                      _pad_to(t, h_pad, w_pad),
                      _pad_to(packed, h_pad, w_pad),
                      tr)
    sg, sg2, cnt, smag, sang, cntg = (sums[i] for i in range(6))

    # --- SILog (matches torch.var unbiased + beta * mean^2, x10 sqrt) -------
    # Guards avoid NaN/inf when cnt <= 1 (fully masked-out batch).
    mean_g = sg / jnp.maximum(cnt, 1.0)
    var_g = jnp.maximum(sg2 - cnt * mean_g * mean_g, 0.0) / jnp.maximum(cnt - 1.0, 1.0)
    dg = var_g + _BETA * mean_g * mean_g
    l_si = 10.0 * jnp.sqrt(dg)

    total_loss = config.w_si * l_si
    losses = {'silog_loss': l_si}

    if config.w_grad > 0:
        # --- GradL1: mean L1 over masked gradient magnitude + angle ---------
        denom = jnp.maximum(cntg, 1.0)
        l_grad = smag / denom + sang / denom
        total_loss = total_loss + config.w_grad * l_grad
        losses['l_grad'] = l_grad
    else:
        losses['l_grad'] = jnp.float32(0.0)

    return total_loss, losses, pred


if __name__ == "__main__":
    key = jax.random.PRNGKey(0)
    k1, k2, k3 = jax.random.split(key, 3)

    N = 2
    Hp, Wp = 8, 8      # network output resolution (exercises the resize path)
    H, W = 16, 16      # ground-truth resolution (exercises tile padding)
    pred_depths = jax.random.uniform(k1, (N, 1, Hp, Wp), jnp.float32, 0.5, 10.0)
    depths_gt = jax.random.uniform(k2, (N, 1, H, W), jnp.float32, 0.5, 10.0)
    mask = jax.random.uniform(k3, (N, 1, H, W), jnp.float32) > 0.2

    config = Config(w_si=1.0, w_grad=0.1)

    total_loss, losses, pred = zoe_depth_loss(pred_depths, depths_gt, mask, config)
    jax.block_until_ready((total_loss, losses, pred))
    print("KERNEL_OK")
</pallas_src>

<mosaic_0001>
module attributes {stable_mosaic.version = 11 : i64} {
  func.func @_loss_sums_kernel(%arg0: i32, %arg1: i32, %arg2: memref<1x16x128xf32, #tpu.memory_space<vmem>>, %arg3: memref<1x16x128xf32, #tpu.memory_space<vmem>>, %arg4: memref<1x16x128xf32, #tpu.memory_space<vmem>>, %arg5: memref<1x8x128xf32, #tpu.memory_space<vmem>>, %arg6: memref<1x8x128xf32, #tpu.memory_space<vmem>>, %arg7: memref<1x1x8x128xf32, #tpu.memory_space<vmem>>) attributes {dimension_semantics = [#tpu.dimension_semantics<parallel>, #tpu.dimension_semantics<parallel>], iteration_bounds = array<i64: 2, 1>, scalar_prefetch = 0 : i64, scratch_operands = 0 : i64, tpu.core_type = #tpu.core_type<tc>, window_params = [{transform_indices = @transform_0, window_bounds = array<i64: 1, 16, 128>}, {transform_indices = @transform_1, window_bounds = array<i64: 1, 16, 128>}, {transform_indices = @transform_2, window_bounds = array<i64: 1, 16, 128>}, {transform_indices = @transform_3, window_bounds = array<i64: 1, 8, 128>}, {transform_indices = @transform_4, window_bounds = array<i64: 1, 8, 128>}, {transform_indices = @transform_5, window_bounds = array<i64: 1, 1, 8, 128>}]} {
    %0 = tpu.iota {dimensions = array<i32: 0>} : vector<8x128xi32>
    %c0_i32 = arith.constant 0 : i32
    %1 = vector.broadcast %c0_i32 : i32 to vector<8x128xi32>
    %2 = arith.cmpi eq, %0, %1 : vector<8x128xi32>
    %cst = arith.constant 0.000000e+00 : f32
    %3 = vector.broadcast %cst : f32 to vector<8x128xf32>
    %c0 = arith.constant 0 : index
    %c0_0 = arith.constant 0 : index
    %c0_1 = arith.constant 0 : index
    %4 = vector.load %arg5[%c0, %c0_0, %c0_1] : memref<1x8x128xf32, #tpu.memory_space<vmem>>, vector<1x8x128xf32>
    %5 = vector.shape_cast %4 : vector<1x8x128xf32> to vector<8x128xf32>
    %c0_2 = arith.constant 0 : index
    %c0_3 = arith.constant 0 : index
    %c0_4 = arith.constant 0 : index
    %6 = vector.load %arg6[%c0_2, %c0_3, %c0_4] : memref<1x8x128xf32, #tpu.memory_space<vmem>>, vector<1x8x128xf32>
    %7 = vector.shape_cast %6 : vector<1x8x128xf32> to vector<8x128xf32>
    %c0_5 = arith.constant 0 : index
    %c0_6 = arith.constant 0 : index
    %c0_7 = arith.constant 0 : index
    %8 = vector.load %arg2[%c0_5, %c0_6, %c0_7] : memref<1x16x128xf32, #tpu.memory_space<vmem>>, vector<1x8x128xf32>
    %9 = vector.shape_cast %8 : vector<1x8x128xf32> to vector<8x128xf32>
    %c0_8 = arith.constant 0 : index
    %c0_9 = arith.constant 0 : index
    %c0_10 = arith.constant 0 : index
    %10 = vector.load %arg3[%c0_8, %c0_9, %c0_10] : memref<1x16x128xf32, #tpu.memory_space<vmem>>, vector<1x8x128xf32>
    %11 = vector.shape_cast %10 : vector<1x8x128xf32> to vector<8x128xf32>
    %c0_11 = arith.constant 0 : index
    %c0_12 = arith.constant 0 : index
    %c0_13 = arith.constant 0 : index
    %12 = vector.load %arg4[%c0_11, %c0_12, %c0_13] : memref<1x16x128xf32, #tpu.memory_space<vmem>>, vector<1x8x128xf32>
    %13 = vector.shape_cast %12 : vector<1x8x128xf32> to vector<8x128xf32>
    %cst_14 = arith.constant 1.000000e+00 : f32
    %14 = vector.broadcast %cst_14 : f32 to vector<8x128xf32>
    %15 = arith.minimumf %13, %14 : vector<8x128xf32>
    %16 = arith.subf %13, %15 : vector<8x128xf32>
    %cst_15 = arith.constant 1.000000e-07 : f32
    %17 = vector.broadcast %cst_15 : f32 to vector<8x128xf32>
    %18 = arith.addf %9, %17 : vector<8x128xf32>
    %19 = math.log %18 : vector<8x128xf32>
    %cst_16 = arith.constant 1.000000e-07 : f32
    %20 = vector.broadcast %cst_16 : f32 to vector<8x128xf32>
    %21 = arith.addf %11, %20 : vector<8x128xf32>
    %22 = math.log %21 : vector<8x128xf32>
    %23 = arith.subf %19, %22 : vector<8x128xf32>
    %24 = arith.mulf %23, %15 : vector<8x128xf32>
    %25 = arith.addf %3, %24 : vector<8x128xf32>
    %26 = arith.mulf %24, %24 : vector<8x128xf32>
    %27 = arith.addf %3, %26 : vector<8x128xf32>
    %28 = arith.addf %3, %15 : vector<8x128xf32>
    %c1_i32 = arith.constant 1 : i32
    %29 = tpu.dynamic_rotate %5 by %c1_i32 dim 0 : vector<8x128xf32>, i32 -> vector<8x128xf32>
    %c1_i32_17 = arith.constant 1 : i32
    %30 = tpu.dynamic_rotate %9 by %c1_i32_17 dim 0 : vector<8x128xf32>, i32 -> vector<8x128xf32>
    %31 = arith.select %2, %29, %30 : vector<8x128xi1>, vector<8x128xf32>
    %c1_i32_18 = arith.constant 1 : i32
    %32 = tpu.dynamic_rotate %7 by %c1_i32_18 dim 0 : vector<8x128xf32>, i32 -> vector<8x128xf32>
    %c1_i32_19 = arith.constant 1 : i32
    %33 = tpu.dynamic_rotate %11 by %c1_i32_19 dim 0 : vector<8x128xf32>, i32 -> vector<8x128xf32>
    %34 = arith.select %2, %32, %33 : vector<8x128xi1>, vector<8x128xf32>
    %c1_i32_20 = arith.constant 1 : i32
    %35 = tpu.dynamic_rotate %9 by %c1_i32_20 dim 1 : vector<8x128xf32>, i32 -> vector<8x128xf32>
    %36 = arith.subf %9, %35 : vector<8x128xf32>
    %c1_i32_21 = arith.constant 1 : i32
    %37 = tpu.dynamic_rotate %11 by %c1_i32_21 dim 1 : vector<8x128xf32>, i32 -> vector<8x128xf32>
    %38 = arith.subf %11, %37 : vector<8x128xf32>
    %39 = arith.subf %9, %31 : vector<8x128xf32>
    %40 = arith.subf %11, %34 : vector<8x128xf32>
    %41 = arith.mulf %36, %36 : vector<8x128xf32>
    %42 = arith.mulf %39, %39 : vector<8x128xf32>
    %43 = arith.addf %41, %42 : vector<8x128xf32>
    %44 = arith.mulf %38, %38 : vector<8x128xf32>
    %45 = arith.mulf %40, %40 : vector<8x128xf32>
    %46 = arith.addf %44, %45 : vector<8x128xf32>
    %cst_22 = arith.constant 1.000000e-10 : f32
    %47 = vector.broadcast %cst_22 : f32 to vector<8x128xf32>
    %48 = arith.addf %36, %47 : vector<8x128xf32>
    %49 = tpu.reciprocal %48 {approx = true} : vector<8x128xf32> -> vector<8x128xf32>
    %50 = arith.mulf %39, %49 : vector<8x128xf32>
    %51 = math.absf %50 : vector<8x128xf32>
    %cst_23 = arith.constant 2.41421366 : f32
    %52 = vector.broadcast %cst_23 : f32 to vector<8x128xf32>
    %53 = arith.cmpf ogt, %51, %52 : vector<8x128xf32>
    %cst_24 = arith.constant dense<true> : vector<8x128xi1>
    %54 = arith.xori %53, %cst_24 : vector<8x128xi1>
    %cst_25 = arith.constant 0.414213568 : f32
    %55 = vector.broadcast %cst_25 : f32 to vector<8x128xf32>
    %56 = arith.cmpf ogt, %51, %55 : vector<8x128xf32>
    %57 = arith.andi %54, %56 : vector<8x128xi1>
    %cst_26 = arith.constant 1.000000e-10 : f32
    %58 = vector.broadcast %cst_26 : f32 to vector<8x128xf32>
    %59 = arith.addf %51, %58 : vector<8x128xf32>
    %60 = tpu.reciprocal %59 {approx = true} : vector<8x128xf32> -> vector<8x128xf32>
    %cst_27 = arith.constant 1.000000e+00 : f32
    %61 = vector.broadcast %cst_27 : f32 to vector<8x128xf32>
    %62 = arith.addf %51, %61 : vector<8x128xf32>
    %63 = tpu.reciprocal %62 {approx = true} : vector<8x128xf32> -> vector<8x128xf32>
    %cst_28 = arith.constant 0.000000e+00 : f32
    %64 = vector.broadcast %cst_28 : f32 to vector<8x128xf32>
    %65 = arith.subf %64, %60 : vector<8x128xf32>
    %cst_29 = arith.constant 1.000000e+00 : f32
    %66 = vector.broadcast %cst_29 : f32 to vector<8x128xf32>
    %67 = arith.subf %51, %66 : vector<8x128xf32>
    %68 = arith.mulf %67, %63 : vector<8x128xf32>
    %69 = arith.select %57, %68, %51 : vector<8x128xi1>, vector<8x128xf32>
    %70 = arith.select %53, %65, %69 : vector<8x128xi1>, vector<8x128xf32>
    %cst_30 = arith.constant 0.785398185 : f32
    %cst_31 = arith.constant 0.000000e+00 : f32
    %71 = vector.broadcast %cst_30 : f32 to vector<8x128xf32>
    %72 = vector.broadcast %cst_31 : f32 to vector<8x128xf32>
    %73 = arith.select %57, %71, %72 : vector<8x128xi1>, vector<8x128xf32>
    %cst_32 = arith.constant 1.57079637 : f32
    %74 = vector.broadcast %cst_32 : f32 to vector<8x128xf32>
    %75 = arith.select %53, %74, %73 : vector<8x128xi1>, vector<8x128xf32>
    %76 = arith.mulf %70, %70 : vector<8x128xf32>
    %cst_33 = arith.constant 0.0805374458 : f32
    %77 = vector.broadcast %cst_33 : f32 to vector<8x128xf32>
    %78 = arith.mulf %77, %76 : vector<8x128xf32>
    %cst_34 = arith.constant 0.138776854 : f32
    %79 = vector.broadcast %cst_34 : f32 to vector<8x128xf32>
    %80 = arith.subf %78, %79 : vector<8x128xf32>
    %81 = arith.mulf %80, %76 : vector<8x128xf32>
    %cst_35 = arith.constant 0.199777111 : f32
    %82 = vector.broadcast %cst_35 : f32 to vector<8x128xf32>
    %83 = arith.addf %81, %82 : vector<8x128xf32>
    %84 = arith.mulf %83, %76 : vector<8x128xf32>
    %cst_36 = arith.constant 0.333329499 : f32
    %85 = vector.broadcast %cst_36 : f32 to vector<8x128xf32>
    %86 = arith.subf %84, %85 : vector<8x128xf32>
    %87 = arith.mulf %86, %76 : vector<8x128xf32>
    %88 = arith.mulf %87, %70 : vector<8x128xf32>
    %89 = arith.addf %75, %88 : vector<8x128xf32>
    %90 = arith.addf %89, %70 : vector<8x128xf32>
    %cst_37 = arith.constant 0.000000e+00 : f32
    %91 = vector.broadcast %cst_37 : f32 to vector<8x128xf32>
    %92 = arith.cmpf olt, %50, %91 : vector<8x128xf32>
    %cst_38 = arith.constant 0.000000e+00 : f32
    %93 = vector.broadcast %cst_38 : f32 to vector<8x128xf32>
    %94 = arith.subf %93, %90 : vector<8x128xf32>
    %95 = arith.select %92, %94, %90 : vector<8x128xi1>, vector<8x128xf32>
    %cst_39 = arith.constant 1.000000e-10 : f32
    %96 = vector.broadcast %cst_39 : f32 to vector<8x128xf32>
    %97 = arith.addf %38, %96 : vector<8x128xf32>
    %98 = tpu.reciprocal %97 {approx = true} : vector<8x128xf32> -> vector<8x128xf32>
    %99 = arith.mulf %40, %98 : vector<8x128xf32>
    %100 = math.absf %99 : vector<8x128xf32>
    %cst_40 = arith.constant 2.41421366 : f32
    %101 = vector.broadcast %cst_40 : f32 to vector<8x128xf32>
    %102 = arith.cmpf ogt, %100, %101 : vector<8x128xf32>
    %cst_41 = arith.constant dense<true> : vector<8x128xi1>
    %103 = arith.xori %102, %cst_41 : vector<8x128xi1>
    %cst_42 = arith.constant 0.414213568 : f32
    %104 = vector.broadcast %cst_42 : f32 to vector<8x128xf32>
    %105 = arith.cmpf ogt, %100, %104 : vector<8x128xf32>
    %106 = arith.andi %103, %105 : vector<8x128xi1>
    %cst_43 = arith.constant 1.000000e-10 : f32
    %107 = vector.broadcast %cst_43 : f32 to vector<8x128xf32>
    %108 = arith.addf %100, %107 : vector<8x128xf32>
    %109 = tpu.reciprocal %108 {approx = true} : vector<8x128xf32> -> vector<8x128xf32>
    %cst_44 = arith.constant 1.000000e+00 : f32
    %110 = vector.broadcast %cst_44 : f32 to vector<8x128xf32>
    %111 = arith.addf %100, %110 : vector<8x128xf32>
    %112 = tpu.reciprocal %111 {approx = true} : vector<8x128xf32> -> vector<8x128xf32>
    %cst_45 = arith.constant 0.000000e+00 : f32
    %113 = vector.broadcast %cst_45 : f32 to vector<8x128xf32>
    %114 = arith.subf %113, %109 : vector<8x128xf32>
    %cst_46 = arith.constant 1.000000e+00 : f32
    %115 = vector.broadcast %cst_46 : f32 to vector<8x128xf32>
    %116 = arith.subf %100, %115 : vector<8x128xf32>
    %117 = arith.mulf %116, %112 : vector<8x128xf32>
    %118 = arith.select %106, %117, %100 : vector<8x128xi1>, vector<8x128xf32>
    %119 = arith.select %102, %114, %118 : vector<8x128xi1>, vector<8x128xf32>
    %cst_47 = arith.constant 0.785398185 : f32
    %cst_48 = arith.constant 0.000000e+00 : f32
    %120 = vector.broadcast %cst_47 : f32 to vector<8x128xf32>
    %121 = vector.broadcast %cst_48 : f32 to vector<8x128xf32>
    %122 = arith.select %106, %120, %121 : vector<8x128xi1>, vector<8x128xf32>
    %cst_49 = arith.constant 1.57079637 : f32
    %123 = vector.broadcast %cst_49 : f32 to vector<8x128xf32>
    %124 = arith.select %102, %123, %122 : vector<8x128xi1>, vector<8x128xf32>
    %125 = arith.mulf %119, %119 : vector<8x128xf32>
    %cst_50 = arith.constant 0.0805374458 : f32
    %126 = vector.broadcast %cst_50 : f32 to vector<8x128xf32>
    %127 = arith.mulf %126, %125 : vector<8x128xf32>
    %cst_51 = arith.constant 0.138776854 : f32
    %128 = vector.broadcast %cst_51 : f32 to vector<8x128xf32>
    %129 = arith.subf %127, %128 : vector<8x128xf32>
    %130 = arith.mulf %129, %125 : vector<8x128xf32>
    %cst_52 = arith.constant 0.199777111 : f32
    %131 = vector.broadcast %cst_52 : f32 to vector<8x128xf32>
    %132 = arith.addf %130, %131 : vector<8x128xf32>
    %133 = arith.mulf %132, %125 : vector<8x128xf32>
    %cst_53 = arith.constant 0.333329499 : f32
    %134 = vector.broadcast %cst_53 : f32 to vector<8x128xf32>
    %135 = arith.subf %133, %134 : vector<8x128xf32>
    %136 = arith.mulf %135, %125 : vector<8x128xf32>
    %137 = arith.mulf %136, %119 : vector<8x128xf32>
    %138 = arith.addf %124, %137 : vector<8x128xf32>
    %139 = arith.addf %138, %119 : vector<8x128xf32>
    %cst_54 = arith.constant 0.000000e+00 : f32
    %140 = vector.broadcast %cst_54 : f32 to vector<8x128xf32>
    %141 = arith.cmpf olt, %99, %140 : vector<8x128xf32>
    %cst_55 = arith.constant 0.000000e+00 : f32
    %142 = vector.broadcast %cst_55 : f32 to vector<8x128xf32>
    %143 = arith.subf %142, %139 : vector<8x128xf32>
    %144 = arith.select %141, %143, %139 : vector<8x128xi1>, vector<8x128xf32>
    %145 = arith.subf %43, %46 : vector<8x128xf32>
    %146 = math.absf %145 : vector<8x128xf32>
    %147 = arith.mulf %146, %16 : vector<8x128xf32>
    %148 = arith.addf %3, %147 : vector<8x128xf32>
    %149 = arith.subf %95, %144 : vector<8x128xf32>
    %150 = math.absf %149 : vector<8x128xf32>
    %151 = arith.mulf %150, %16 : vector<8x128xf32>
    %152 = arith.addf %3, %151 : vector<8x128xf32>
    %153 = arith.addf %3, %16 : vector<8x128xf32>
    %c1_i32_56 = arith.constant 1 : i32
    %c8_i32 = arith.constant 8 : i32
    %154 = arith.muli %c1_i32_56, %c8_i32 : i32
    %155 = tpu.assume_multiple %154, 8 : i32
    %c8_i32_57 = arith.constant 8 : i32
    %156 = arith.subi %155, %c8_i32_57 : i32
    %157 = tpu.assume_multiple %156, 8 : i32
    %c0_58 = arith.constant 0 : index
    %158 = arith.index_cast %157 : i32 to index
    %c0_59 = arith.constant 0 : index
    %159 = vector.load %arg2[%c0_58, %158, %c0_59] : memref<1x16x128xf32, #tpu.memory_space<vmem>>, vector<1x8x128xf32>
    %160 = vector.shape_cast %159 : vector<1x8x128xf32> to vector<8x128xf32>
    %c0_60 = arith.constant 0 : index
    %161 = arith.index_cast %157 : i32 to index
    %c0_61 = arith.constant 0 : index
    %162 = vector.load %arg3[%c0_60, %161, %c0_61] : memref<1x16x128xf32, #tpu.memory_space<vmem>>, vector<1x8x128xf32>
    %163 = vector.shape_cast %162 : vector<1x8x128xf32> to vector<8x128xf32>
    %c0_62 = arith.constant 0 : index
    %164 = arith.index_cast %155 : i32 to index
    %c0_63 = arith.constant 0 : index
    %165 = vector.load %arg2[%c0_62, %164, %c0_63] : memref<1x16x128xf32, #tpu.memory_space<vmem>>, vector<1x8x128xf32>
    %166 = vector.shape_cast %165 : vector<1x8x128xf32> to vector<8x128xf32>
    %c0_64 = arith.constant 0 : index
    %167 = arith.index_cast %155 : i32 to index
    %c0_65 = arith.constant 0 : index
    %168 = vector.load %arg3[%c0_64, %167, %c0_65] : memref<1x16x128xf32, #tpu.memory_space<vmem>>, vector<1x8x128xf32>
    %169 = vector.shape_cast %168 : vector<1x8x128xf32> to vector<8x128xf32>
    %c0_66 = arith.constant 0 : index
    %170 = arith.index_cast %155 : i32 to index
    %c0_67 = arith.constant 0 : index
    %171 = vector.load %arg4[%c0_66, %170, %c0_67] : memref<1x16x128xf32, #tpu.memory_space<vmem>>, vector<1x8x128xf32>
    %172 = vector.shape_cast %171 : vector<1x8x128xf32> to vector<8x128xf32>
    %cst_68 = arith.constant 1.000000e+00 : f32
    %173 = vector.broadcast %cst_68 : f32 to vector<8x128xf32>
    %174 = arith.minimumf %172, %173 : vector<8x128xf32>
    %175 = arith.subf %172, %174 : vector<8x128xf32>
    %cst_69 = arith.constant 1.000000e-07 : f32
    %176 = vector.broadcast %cst_69 : f32 to vector<8x128xf32>
    %177 = arith.addf %166, %176 : vector<8x128xf32>
    %178 = math.log %177 : vector<8x128xf32>
    %cst_70 = arith.constant 1.000000e-07 : f32
    %179 = vector.broadcast %cst_70 : f32 to vector<8x128xf32>
    %180 = arith.addf %169, %179 : vector<8x128xf32>
    %181 = math.log %180 : vector<8x128xf32>
    %182 = arith.subf %178, %181 : vector<8x128xf32>
    %183 = arith.mulf %182, %174 : vector<8x128xf32>
    %184 = arith.addf %25, %183 : vector<8x128xf32>
    %185 = arith.mulf %183, %183 : vector<8x128xf32>
    %186 = arith.addf %27, %185 : vector<8x128xf32>
    %187 = arith.addf %28, %174 : vector<8x128xf32>
    %c1_i32_71 = arith.constant 1 : i32
    %188 = tpu.dynamic_rotate %160 by %c1_i32_71 dim 0 : vector<8x128xf32>, i32 -> vector<8x128xf32>
    %c1_i32_72 = arith.constant 1 : i32
    %189 = tpu.dynamic_rotate %166 by %c1_i32_72 dim 0 : vector<8x128xf32>, i32 -> vector<8x128xf32>
    %190 = arith.select %2, %188, %189 : vector<8x128xi1>, vector<8x128xf32>
    %c1_i32_73 = arith.constant 1 : i32
    %191 = tpu.dynamic_rotate %163 by %c1_i32_73 dim 0 : vector<8x128xf32>, i32 -> vector<8x128xf32>
    %c1_i32_74 = arith.constant 1 : i32
    %192 = tpu.dynamic_rotate %169 by %c1_i32_74 dim 0 : vector<8x128xf32>, i32 -> vector<8x128xf32>
    %193 = arith.select %2, %191, %192 : vector<8x128xi1>, vector<8x128xf32>
    %c1_i32_75 = arith.constant 1 : i32
    %194 = tpu.dynamic_rotate %166 by %c1_i32_75 dim 1 : vector<8x128xf32>, i32 -> vector<8x128xf32>
    %195 = arith.subf %166, %194 : vector<8x128xf32>
    %c1_i32_76 = arith.constant 1 : i32
    %196 = tpu.dynamic_rotate %169 by %c1_i32_76 dim 1 : vector<8x128xf32>, i32 -> vector<8x128xf32>
    %197 = arith.subf %169, %196 : vector<8x128xf32>
    %198 = arith.subf %166, %190 : vector<8x128xf32>
    %199 = arith.subf %169, %193 : vector<8x128xf32>
    %200 = arith.mulf %195, %195 : vector<8x128xf32>
    %201 = arith.mulf %198, %198 : vector<8x128xf32>
    %202 = arith.addf %200, %201 : vector<8x128xf32>
    %203 = arith.mulf %197, %197 : vector<8x128xf32>
    %204 = arith.mulf %199, %199 : vector<8x128xf32>
    %205 = arith.addf %203, %204 : vector<8x128xf32>
    %cst_77 = arith.constant 1.000000e-10 : f32
    %206 = vector.broadcast %cst_77 : f32 to vector<8x128xf32>
    %207 = arith.addf %195, %206 : vector<8x128xf32>
    %208 = tpu.reciprocal %207 {approx = true} : vector<8x128xf32> -> vector<8x128xf32>
    %209 = arith.mulf %198, %208 : vector<8x128xf32>
    %210 = math.absf %209 : vector<8x128xf32>
    %cst_78 = arith.constant 2.41421366 : f32
    %211 = vector.broadcast %cst_78 : f32 to vector<8x128xf32>
    %212 = arith.cmpf ogt, %210, %211 : vector<8x128xf32>
    %cst_79 = arith.constant dense<true> : vector<8x128xi1>
    %213 = arith.xori %212, %cst_79 : vector<8x128xi1>
    %cst_80 = arith.constant 0.414213568 : f32
    %214 = vector.broadcast %cst_80 : f32 to vector<8x128xf32>
    %215 = arith.cmpf ogt, %210, %214 : vector<8x128xf32>
    %216 = arith.andi %213, %215 : vector<8x128xi1>
    %cst_81 = arith.constant 1.000000e-10 : f32
    %217 = vector.broadcast %cst_81 : f32 to vector<8x128xf32>
    %218 = arith.addf %210, %217 : vector<8x128xf32>
    %219 = tpu.reciprocal %218 {approx = true} : vector<8x128xf32> -> vector<8x128xf32>
    %cst_82 = arith.constant 1.000000e+00 : f32
    %220 = vector.broadcast %cst_82 : f32 to vector<8x128xf32>
    %221 = arith.addf %210, %220 : vector<8x128xf32>
    %222 = tpu.reciprocal %221 {approx = true} : vector<8x128xf32> -> vector<8x128xf32>
    %cst_83 = arith.constant 0.000000e+00 : f32
    %223 = vector.broadcast %cst_83 : f32 to vector<8x128xf32>
    %224 = arith.subf %223, %219 : vector<8x128xf32>
    %cst_84 = arith.constant 1.000000e+00 : f32
    %225 = vector.broadcast %cst_84 : f32 to vector<8x128xf32>
    %226 = arith.subf %210, %225 : vector<8x128xf32>
    %227 = arith.mulf %226, %222 : vector<8x128xf32>
    %228 = arith.select %216, %227, %210 : vector<8x128xi1>, vector<8x128xf32>
    %229 = arith.select %212, %224, %228 : vector<8x128xi1>, vector<8x128xf32>
    %cst_85 = arith.constant 0.785398185 : f32
    %cst_86 = arith.constant 0.000000e+00 : f32
    %230 = vector.broadcast %cst_85 : f32 to vector<8x128xf32>
    %231 = vector.broadcast %cst_86 : f32 to vector<8x128xf32>
    %232 = arith.select %216, %230, %231 : vector<8x128xi1>, vector<8x128xf32>
    %cst_87 = arith.constant 1.57079637 : f32
    %233 = vector.broadcast %cst_87 : f32 to vector<8x128xf32>
    %234 = arith.select %212, %233, %232 : vector<8x128xi1>, vector<8x128xf32>
    %235 = arith.mulf %229, %229 : vector<8x128xf32>
    %cst_88 = arith.constant 0.0805374458 : f32
    %236 = vector.broadcast %cst_88 : f32 to vector<8x128xf32>
    %237 = arith.mulf %236, %235 : vector<8x128xf32>
    %cst_89 = arith.constant 0.138776854 : f32
    %238 = vector.broadcast %cst_89 : f32 to vector<8x128xf32>
    %239 = arith.subf %237, %238 : vector<8x128xf32>
    %240 = arith.mulf %239, %235 : vector<8x128xf32>
    %cst_90 = arith.constant 0.199777111 : f32
    %241 = vector.broadcast %cst_90 : f32 to vector<8x128xf32>
    %242 = arith.addf %240, %241 : vector<8x128xf32>
    %243 = arith.mulf %242, %235 : vector<8x128xf32>
    %cst_91 = arith.constant 0.333329499 : f32
    %244 = vector.broadcast %cst_91 : f32 to vector<8x128xf32>
    %245 = arith.subf %243, %244 : vector<8x128xf32>
    %246 = arith.mulf %245, %235 : vector<8x128xf32>
    %247 = arith.mulf %246, %229 : vector<8x128xf32>
    %248 = arith.addf %234, %247 : vector<8x128xf32>
    %249 = arith.addf %248, %229 : vector<8x128xf32>
    %cst_92 = arith.constant 0.000000e+00 : f32
    %250 = vector.broadcast %cst_92 : f32 to vector<8x128xf32>
    %251 = arith.cmpf olt, %209, %250 : vector<8x128xf32>
    %cst_93 = arith.constant 0.000000e+00 : f32
    %252 = vector.broadcast %cst_93 : f32 to vector<8x128xf32>
    %253 = arith.subf %252, %249 : vector<8x128xf32>
    %254 = arith.select %251, %253, %249 : vector<8x128xi1>, vector<8x128xf32>
    %cst_94 = arith.constant 1.000000e-10 : f32
    %255 = vector.broadcast %cst_94 : f32 to vector<8x128xf32>
    %256 = arith.addf %197, %255 : vector<8x128xf32>
    %257 = tpu.reciprocal %256 {approx = true} : vector<8x128xf32> -> vector<8x128xf32>
    %258 = arith.mulf %199, %257 : vector<8x128xf32>
    %259 = math.absf %258 : vector<8x128xf32>
    %cst_95 = arith.constant 2.41421366 : f32
    %260 = vector.broadcast %cst_95 : f32 to vector<8x128xf32>
    %261 = arith.cmpf ogt, %259, %260 : vector<8x128xf32>
    %cst_96 = arith.constant dense<true> : vector<8x128xi1>
    %262 = arith.xori %261, %cst_96 : vector<8x128xi1>
    %cst_97 = arith.constant 0.414213568 : f32
    %263 = vector.broadcast %cst_97 : f32 to vector<8x128xf32>
    %264 = arith.cmpf ogt, %259, %263 : vector<8x128xf32>
    %265 = arith.andi %262, %264 : vector<8x128xi1>
    %cst_98 = arith.constant 1.000000e-10 : f32
    %266 = vector.broadcast %cst_98 : f32 to vector<8x128xf32>
    %267 = arith.addf %259, %266 : vector<8x128xf32>
    %268 = tpu.reciprocal %267 {approx = true} : vector<8x128xf32> -> vector<8x128xf32>
    %cst_99 = arith.constant 1.000000e+00 : f32
    %269 = vector.broadcast %cst_99 : f32 to vector<8x128xf32>
    %270 = arith.addf %259, %269 : vector<8x128xf32>
    %271 = tpu.reciprocal %270 {approx = true} : vector<8x128xf32> -> vector<8x128xf32>
    %cst_100 = arith.constant 0.000000e+00 : f32
    %272 = vector.broadcast %cst_100 : f32 to vector<8x128xf32>
    %273 = arith.subf %272, %268 : vector<8x128xf32>
    %cst_101 = arith.constant 1.000000e+00 : f32
    %274 = vector.broadcast %cst_101 : f32 to vector<8x128xf32>
    %275 = arith.subf %259, %274 : vector<8x128xf32>
    %276 = arith.mulf %275, %271 : vector<8x128xf32>
    %277 = arith.select %265, %276, %259 : vector<8x128xi1>, vector<8x128xf32>
    %278 = arith.select %261, %273, %277 : vector<8x128xi1>, vector<8x128xf32>
    %cst_102 = arith.constant 0.785398185 : f32
    %cst_103 = arith.constant 0.000000e+00 : f32
    %279 = vector.broadcast %cst_102 : f32 to vector<8x128xf32>
    %280 = vector.broadcast %cst_103 : f32 to vector<8x128xf32>
    %281 = arith.select %265, %279, %280 : vector<8x128xi1>, vector<8x128xf32>
    %cst_104 = arith.constant 1.57079637 : f32
    %282 = vector.broadcast %cst_104 : f32 to vector<8x128xf32>
    %283 = arith.select %261, %282, %281 : vector<8x128xi1>, vector<8x128xf32>
    %284 = arith.mulf %278, %278 : vector<8x128xf32>
    %cst_105 = arith.constant 0.0805374458 : f32
    %285 = vector.broadcast %cst_105 : f32 to vector<8x128xf32>
    %286 = arith.mulf %285, %284 : vector<8x128xf32>
    %cst_106 = arith.constant 0.138776854 : f32
    %287 = vector.broadcast %cst_106 : f32 to vector<8x128xf32>
    %288 = arith.subf %286, %287 : vector<8x128xf32>
    %289 = arith.mulf %288, %284 : vector<8x128xf32>
    %cst_107 = arith.constant 0.199777111 : f32
    %290 = vector.broadcast %cst_107 : f32 to vector<8x128xf32>
    %291 = arith.addf %289, %290 : vector<8x128xf32>
    %292 = arith.mulf %291, %284 : vector<8x128xf32>
    %cst_108 = arith.constant 0.333329499 : f32
    %293 = vector.broadcast %cst_108 : f32 to vector<8x128xf32>
    %294 = arith.subf %292, %293 : vector<8x128xf32>
    %295 = arith.mulf %294, %284 : vector<8x128xf32>
    %296 = arith.mulf %295, %278 : vector<8x128xf32>
    %297 = arith.addf %283, %296 : vector<8x128xf32>
    %298 = arith.addf %297, %278 : vector<8x128xf32>
    %cst_109 = arith.constant 0.000000e+00 : f32
    %299 = vector.broadcast %cst_109 : f32 to vector<8x128xf32>
    %300 = arith.cmpf olt, %258, %299 : vector<8x128xf32>
    %cst_110 = arith.constant 0.000000e+00 : f32
    %301 = vector.broadcast %cst_110 : f32 to vector<8x128xf32>
    %302 = arith.subf %301, %298 : vector<8x128xf32>
    %303 = arith.select %300, %302, %298 : vector<8x128xi1>, vector<8x128xf32>
    %304 = arith.subf %202, %205 : vector<8x128xf32>
    %305 = math.absf %304 : vector<8x128xf32>
    %306 = arith.mulf %305, %175 : vector<8x128xf32>
    %307 = arith.addf %148, %306 : vector<8x128xf32>
    %308 = arith.subf %254, %303 : vector<8x128xf32>
    %309 = math.absf %308 : vector<8x128xf32>
    %310 = arith.mulf %309, %175 : vector<8x128xf32>
    %311 = arith.addf %152, %310 : vector<8x128xf32>
    %312 = arith.addf %153, %175 : vector<8x128xf32>
    %c1_i32_111 = arith.constant 1 : i32
    %313 = tpu.iota {dimensions = array<i32: 1>} : vector<8x128xi32>
    %cst_112 = arith.constant 0.000000e+00 : f32
    %314 = vector.broadcast %cst_112 : f32 to vector<8x128xf32>
    %c0_i32_113 = arith.constant 0 : i32
    %315 = vector.broadcast %c0_i32_113 : i32 to vector<8x128xi32>
    %316 = arith.cmpi eq, %313, %315 : vector<8x128xi32>
    %317 = vector.shape_cast %184 : vector<8x128xf32> to vector<1x8x128xf32>
    %cst_114 = arith.constant dense<0.000000e+00> : vector<1xf32>
    %318 = vector.multi_reduction <add>, %317, %cst_114 [1, 2] : vector<1x8x128xf32> to vector<1xf32>
    %319 = vector.shape_cast %318 : vector<1xf32> to vector<1x1x1xf32>
    %320 = vector.extract %319[0, 0, 0] : f32 from vector<1x1x1xf32>
    %cst_115 = arith.constant 0.000000e+00 : f32
    %321 = vector.broadcast %320 : f32 to vector<8x128xf32>
    %322 = vector.broadcast %cst_115 : f32 to vector<8x128xf32>
    %323 = arith.select %316, %321, %322 : vector<8x128xi1>, vector<8x128xf32>
    %324 = arith.addf %314, %323 : vector<8x128xf32>
    %c1_i32_116 = arith.constant 1 : i32
    %325 = vector.broadcast %c1_i32_116 : i32 to vector<8x128xi32>
    %326 = arith.cmpi eq, %313, %325 : vector<8x128xi32>
    %327 = vector.shape_cast %186 : vector<8x128xf32> to vector<1x8x128xf32>
    %cst_117 = arith.constant dense<0.000000e+00> : vector<1xf32>
    %328 = vector.multi_reduction <add>, %327, %cst_117 [1, 2] : vector<1x8x128xf32> to vector<1xf32>
    %329 = vector.shape_cast %328 : vector<1xf32> to vector<1x1x1xf32>
    %330 = vector.extract %329[0, 0, 0] : f32 from vector<1x1x1xf32>
    %cst_118 = arith.constant 0.000000e+00 : f32
    %331 = vector.broadcast %330 : f32 to vector<8x128xf32>
    %332 = vector.broadcast %cst_118 : f32 to vector<8x128xf32>
    %333 = arith.select %326, %331, %332 : vector<8x128xi1>, vector<8x128xf32>
    %334 = arith.addf %324, %333 : vector<8x128xf32>
    %c2_i32 = arith.constant 2 : i32
    %335 = vector.broadcast %c2_i32 : i32 to vector<8x128xi32>
    %336 = arith.cmpi eq, %313, %335 : vector<8x128xi32>
    %337 = vector.shape_cast %187 : vector<8x128xf32> to vector<1x8x128xf32>
    %cst_119 = arith.constant dense<0.000000e+00> : vector<1xf32>
    %338 = vector.multi_reduction <add>, %337, %cst_119 [1, 2] : vector<1x8x128xf32> to vector<1xf32>
    %339 = vector.shape_cast %338 : vector<1xf32> to vector<1x1x1xf32>
    %340 = vector.extract %339[0, 0, 0] : f32 from vector<1x1x1xf32>
    %cst_120 = arith.constant 0.000000e+00 : f32
    %341 = vector.broadcast %340 : f32 to vector<8x128xf32>
    %342 = vector.broadcast %cst_120 : f32 to vector<8x128xf32>
    %343 = arith.select %336, %341, %342 : vector<8x128xi1>, vector<8x128xf32>
    %344 = arith.addf %334, %343 : vector<8x128xf32>
    %c3_i32 = arith.constant 3 : i32
    %345 = vector.broadcast %c3_i32 : i32 to vector<8x128xi32>
    %346 = arith.cmpi eq, %313, %345 : vector<8x128xi32>
    %347 = vector.shape_cast %307 : vector<8x128xf32> to vector<1x8x128xf32>
    %cst_121 = arith.constant dense<0.000000e+00> : vector<1xf32>
    %348 = vector.multi_reduction <add>, %347, %cst_121 [1, 2] : vector<1x8x128xf32> to vector<1xf32>
    %349 = vector.shape_cast %348 : vector<1xf32> to vector<1x1x1xf32>
    %350 = vector.extract %349[0, 0, 0] : f32 from vector<1x1x1xf32>
    %cst_122 = arith.constant 0.000000e+00 : f32
    %351 = vector.broadcast %350 : f32 to vector<8x128xf32>
    %352 = vector.broadcast %cst_122 : f32 to vector<8x128xf32>
    %353 = arith.select %346, %351, %352 : vector<8x128xi1>, vector<8x128xf32>
    %354 = arith.addf %344, %353 : vector<8x128xf32>
    %c4_i32 = arith.constant 4 : i32
    %355 = vector.broadcast %c4_i32 : i32 to vector<8x128xi32>
    %356 = arith.cmpi eq, %313, %355 : vector<8x128xi32>
    %357 = vector.shape_cast %311 : vector<8x128xf32> to vector<1x8x128xf32>
    %cst_123 = arith.constant dense<0.000000e+00> : vector<1xf32>
    %358 = vector.multi_reduction <add>, %357, %cst_123 [1, 2] : vector<1x8x128xf32> to vector<1xf32>
    %359 = vector.shape_cast %358 : vector<1xf32> to vector<1x1x1xf32>
    %360 = vector.extract %359[0, 0, 0] : f32 from vector<1x1x1xf32>
    %cst_124 = arith.constant 0.000000e+00 : f32
    %361 = vector.broadcast %360 : f32 to vector<8x128xf32>
    %362 = vector.broadcast %cst_124 : f32 to vector<8x128xf32>
    %363 = arith.select %356, %361, %362 : vector<8x128xi1>, vector<8x128xf32>
    %364 = arith.addf %354, %363 : vector<8x128xf32>
    %c5_i32 = arith.constant 5 : i32
    %365 = vector.broadcast %c5_i32 : i32 to vector<8x128xi32>
    %366 = arith.cmpi eq, %313, %365 : vector<8x128xi32>
    %367 = vector.shape_cast %312 : vector<8x128xf32> to vector<1x8x128xf32>
    %cst_125 = arith.constant dense<0.000000e+00> : vector<1xf32>
    %368 = vector.multi_reduction <add>, %367, %cst_125 [1, 2] : vector<1x8x128xf32> to vector<1xf32>
    %369 = vector.shape_cast %368 : vector<1xf32> to vector<1x1x1xf32>
    %370 = vector.extract %369[0, 0, 0] : f32 from vector<1x1x1xf32>
    %cst_126 = arith.constant 0.000000e+00 : f32
    %371 = vector.broadcast %370 : f32 to vector<8x128xf32>
    %372 = vector.broadcast %cst_126 : f32 to vector<8x128xf32>
    %373 = arith.select %366, %371, %372 : vector<8x128xi1>, vector<8x128xf32>
    %374 = arith.addf %364, %373 : vector<8x128xf32>
    %c0_127 = arith.constant 0 : index
    %c0_128 = arith.constant 0 : index
    %c0_129 = arith.constant 0 : index
    %c0_130 = arith.constant 0 : index
    %375 = vector.load %arg7[%c0_127, %c0_128, %c0_129, %c0_130] : memref<1x1x8x128xf32, #tpu.memory_space<vmem>>, vector<1x1x8x128xf32>
    %376 = vector.shape_cast %375 : vector<1x1x8x128xf32> to vector<8x128xf32>
    %377 = vector.shape_cast %374 : vector<8x128xf32> to vector<1x1x8x128xf32>
    tpu.vector_store %arg7[%c0_127, %c0_128, %c0_129, %c0_130], %377 {strides = array<i32>} : memref<1x1x8x128xf32, #tpu.memory_space<vmem>>, vector<1x1x8x128xf32>,
    return
  }
  func.func @transform_0(%arg0: i32, %arg1: i32) -> (i32, i32, i32) {
    %c0_i32 = arith.constant 0 : i32
    %c0_i32_0 = arith.constant 0 : i32
    return %arg0, %arg1, %c0_i32 : i32, i32, i32
  }
  func.func @transform_1(%arg0: i32, %arg1: i32) -> (i32, i32, i32) {
    %c0_i32 = arith.constant 0 : i32
    %c0_i32_0 = arith.constant 0 : i32
    return %arg0, %arg1, %c0_i32 : i32, i32, i32
  }
  func.func @transform_2(%arg0: i32, %arg1: i32) -> (i32, i32, i32) {
    %c0_i32 = arith.constant 0 : i32
    %c0_i32_0 = arith.constant 0 : i32
    return %arg0, %arg1, %c0_i32 : i32, i32, i32
  }
  func.func @transform_3(%arg0: i32, %arg1: i32) -> (i32, i32, i32) {
    %c2_i32 = arith.constant 2 : i32
    %0 = arith.muli %arg1, %c2_i32 : i32
    %c1_i32 = arith.constant 1 : i32
    %1 = arith.subi %0, %c1_i32 : i32
    %c0_i32 = arith.constant 0 : i32
    %2 = arith.maxsi %1, %c0_i32 : i32
    %c0_i32_0 = arith.constant 0 : i32
    %c0_i32_1 = arith.constant 0 : i32
    return %arg0, %2, %c0_i32_0 : i32, i32, i32
  }
  func.func @transform_4(%arg0: i32, %arg1: i32) -> (i32, i32, i32) {
    %c2_i32 = arith.constant 2 : i32
    %0 = arith.muli %arg1, %c2_i32 : i32
    %c1_i32 = arith.constant 1 : i32
    %1 = arith.subi %0, %c1_i32 : i32
    %c0_i32 = arith.constant 0 : i32
    %2 = arith.maxsi %1, %c0_i32 : i32
    %c0_i32_0 = arith.constant 0 : i32
    %c0_i32_1 = arith.constant 0 : i32
    return %arg0, %2, %c0_i32_0 : i32, i32, i32
  }
  func.func @transform_5(%arg0: i32, %arg1: i32) -> (i32, i32, i32, i32) {
    %c0_i32 = arith.constant 0 : i32
    %c0_i32_0 = arith.constant 0 : i32
    %c0_i32_1 = arith.constant 0 : i32
    return %arg0, %arg1, %c0_i32, %c0_i32_0 : i32, i32, i32, i32
  }
}

</mosaic_0001>

<bundles_post_ra>
// kernel: tpu_custom_call.1
= control target key start
LH: loop header
LB: loop body
LE: loop exit
PB: predicated region body
PF: predicated region fallthrough
CT: control target
= control target key end

     0   :  { %s1855_s0 = inlined_call_operand.hbm [shape: f32[2,16,128], index: 0, kind: input, shape index: {}]   ;;  %s1856_s1 = inlined_call_operand.hbm [shape: f32[2,16,128], index: 1, kind: input, shape index: {}]   ;;  %s1857_s2 = inlined_call_operand.hbm [shape: f32[2,16,128], index: 2, kind: input, shape index: {}]   ;;  %s1858_s3 = inlined_call_operand.hbm [shape: f32[2,16,128], index: 3, kind: input, shape index: {}]   ;;  %s1859_s4 = inlined_call_operand.hbm [shape: f32[2,16,128], index: 4, kind: input, shape index: {}]   ;;  %s1860_s5 = inlined_call_operand.hbm [shape: f32[2,1,8,128], index: 5, kind: output, shape index: {}]  }
   0x1   :  { %1875 = sst [smem:[#allocation23_spill]] %s1855_s0 }
   0x2   :  { %1876 = sst [smem:[#allocation24_spill]] %s1856_s1 }
   0x3   :  { %1877 = sst [smem:[#allocation25_spill]] %s1858_s3 }
   0x4   :  { %1878 = sst [smem:[#allocation26_spill]] %s1860_s5 }
   0x5   :  { %10 = vsyncpa [#allocation3], 0 }
   0x6   :  { %12 = vsyncpa [#allocation3 + $0x1], 0 }
   0x7   :  { %13 = vsyncpa [#allocation6], 0 }
   0x8   :  { %15 = vsyncpa [#allocation6 + $0x1], 0 }
   0x9   :  { %16 = vsyncpa [#allocation9], 0 }
   0xa   :  { %18 = vsyncpa [#allocation9 + $0x1], 0 }
   0xb   :  { %19 = vsyncpa [#allocation4], 0 }
   0xc   :  { %21 = vsyncpa [#allocation4 + $0x1], 0  ;;  %s1425_s18 = smov 0   ;;  %s1427_s19 = smov 0  }
   0xd   :  { %s1429_s20 = smov 0   ;;  %s1431_s21 = smov 0  }
   0xe   :  { %s1433_s22 = smov 0   ;;  %s1435_s23 = smov 0  }
   0xf LB: > { %1879 = sst [smem:[#allocation16_spill]] %s1362_s18  ;;  %s1456_s24 = sadd.s32 4294967295, %s1382_s23   ;;  %s1382_s23 = sphi %s1435_s23, %s27_s23   ;;  %s1378_s22 = sphi %s1433_s22, %s1920_s22   ;;  %s1374_s21 = sphi %s1431_s21, %s1919_s21   ;;  %s1370_s20 = sphi %s1429_s20, %s1918_s20   ;;  %s1366_s19 = sphi %s1427_s19, %s1922_s19   ;;  %s1362_s18 = sphi %s1425_s18, %s1921_s18  }
  0x10   : > { %1880 = sst [smem:[#allocation17_spill]] %s1370_s20  ;;  %s974_s25 = sadd.s32 4294967294, %s1382_s23  }
  0x11   : > { %1881 = sst [smem:[#allocation18_spill]] %s1378_s22  ;;  %s39_s26 = sadd.s32 1, %s1378_s22 }
  0x12   : > { %1882 = sst [smem:[#allocation19_spill]] %s1382_s23  ;;  %s48_s27 = sadd.s32 1, %s1370_s20 }
  0x13   : > { %p41_p0 = scmp.ge.s32.totalorder %s39_s26, 2  ;;  %p55_p1 = scmp.ne.s32.totalorder %s1370_s20, %s1366_s19 }
  0x14   : > { %p56_p2 = scmp.eq.s32.totalorder %s1382_s23, 0  ;;  %p61_p3 = scmp.ne.s32.totalorder %s1366_s19, %s1362_s18 }
  0x15   : > { %s1924_s26 = smov (%p41_p0, %s39_s26), 0  ;;  %p62_p5 = scmp.eq.s32.totalorder %s1456_s24, 0 }
  0x16   : > { %1883 = sst [smem:[#allocation20_spill]] %s1924_s26  ;;  %p1468_p4 = por %p56_p2, %p55_p1 }
  0x17   : > { %s43_s29 = ssub.s32 %s1378_s22, %s1924_s26  ;;  %p215_p6 = scmp.eq.s32.totalorder %s1456_s24, 1 }
  0x18   : > { %p46_p7 = scmp.eq.s32.totalorder %s43_s29, 0  ;;  %p1476_p8 = por %p62_p5, %p61_p3 }
  0x19   : > { %p1480_p9 = por %p215_p6, %p55_p1  ;;  %p221_p10 = scmp.eq.s32.totalorder %s974_s25, 1 }
  0x1a   : > { %s1485_s7 = scalar_select %p46_p7, %s1370_s20, %s48_s27  }
  0x1b   : > { %p1487_p11 = por %p221_p10, %p61_p3  ;;  %p1067_p13 = scmp.lt.s32.totalorder %s1382_s23, 2 }
  0x1c   : > { %1887 = sst [smem:[#allocation21_spill]] %s1485_s7  ;;  %s1494_s9 = sand.u32 1, %s1370_s20  }
  0x1d   : > { %s1888_s8 = scalar_select %p1487_p11, 1, 0 }
  0x1e   : > { %s1497_s10 = sshll.u32 %s1494_s9, 4  ;;  %s1500_s11 = sshll.u32 %s1378_s22, 8 }
  0x1f   : > { %1889 = sst [smem:[#allocation22_spill]] %s1888_s8  ;;  %p1504_p0 = pnand %p1067_p13, %p1468_p4 }
  0x20   : > { %s1861_s13 = sand.u32 1, %s1382_s23   ;;  %s1891_s1 = sld [smem:[#allocation24_spill]] }
  0x21   : > { %s268_s17 = scalar_lea.vmem [#allocation5], %s1497_s10  ;;  %p992_p1 = scmp.ge.s32.totalorder %s1382_s23, 1 }
  0x22   : > { %s277_s25 = sshll.u32 %s268_s17, 4  ;;  %p356_p2 = scmp.lt.s32.totalorder %s1382_s23, 3  ;;  %s278_s25 = int_to_ptr.vmem [resolvable:$true] %s277_s25 }
  0x23   : > { %s1518_s27 = scalar_lea.sflag [#allocation6], %s1861_s13  ;;  %p1522_p3 = pneg %p1504_p0 }
  0x24   : > { %s1167_s29 = scalar_lea.vmem %s278_s25, 256  ;;  %s1384_s14 = smov [#allocation5]  }
  0x25   : > { %p1168_p4 = scmp.ne.s32.totalorder %s278_s25, %s1167_s29  ;;  %s1172_s15 = sshll.u32 %s1384_s14, 4  ;;  %s1173_s15 = int_to_ptr.vmem [resolvable:$false] %s1172_s15 }
  0x26   : > { %s276_s16 = scalar_lea.hbm %s1891_s1, %s1500_s11  ;;  %s1174_s17 = scalar_lea.vmem %s1173_s15, 512 }
  0x27   : > { %p1170_p5 = pnand %p1168_p4, %p1522_p3  ;;  %p1175_p7 = scmp.lt.s32.totalorder %s278_s25, %s1173_s15 }
  0x28   : > { %p1176_p10 = scmp.lt.s32.totalorder %s1174_s17, %s1167_s29 }
  0x29   : > { %p1171_p6 = pneg %p1170_p5 }
  0x2a   : > { %p1177_p13 = por %p1176_p10, %p1175_p7 }
  0x2c   : > { %p1178_p12 = pnand %p1177_p13, %p1171_p6 }
  0x2e   : > { %1181 = shalt.err (!%p1178_p12)
}
  0x2f   : > { %s1867_s13 = smov 128   ;;  %s1870_s1 = smov 8  }
  0x30   : > { %1053 = dma.hbm_to_vmem [thread:$0]  (!%p1504_p0), %s276_s16, 256, %s278_s25, %s1518_s27, %s1867_s13, %s1867_s13, %s1870_s1  }
  0x31   : > { %p1538_p4 = pnand %p992_p1, %p356_p2  ;;  %s1869_s14 = sshll.u32 %s1494_s9, 3 }
  0x32   : > { %s1894_s3 = sld [smem:[#allocation25_spill]]  ;;  %s314_s22 = scalar_lea.vmem [#allocation8], %s1869_s14 }
  0x33   : > { %s327_s7 = sshll.u32 %s314_s22, 4  ;;  %s1895_s20 = sand.u32 1, %s1382_s23   ;;  %s328_s7 = int_to_ptr.vmem [resolvable:$true] %s327_s7 }
  0x34   : > { %s1551_s8 = scalar_lea.sflag [#allocation9], %s1895_s20  ;;  %s1195_s18 = scalar_lea.vmem %s328_s7, 128 }
  0x35   : > { %p1196_p12 = scmp.ne.s32.totalorder %s328_s7, %s1195_s18  ;;  %s1387_s16 = smov [#allocation8]  }
  0x36   : > { %s1200_s25 = sshll.u32 %s1387_s16, 4  ;;  %s1201_s25 = int_to_ptr.vmem [resolvable:$false] %s1200_s25 }
  0x37   : > { %p1198_p5 = pnand %p1196_p12, %p1522_p3  ;;  %s1202_s13 = scalar_lea.vmem %s1201_s25, 256 }
  0x38   : > { %s325_s26 = scalar_lea.hbm %s1894_s3, %s1500_s11  ;;  %p1203_p2 = scmp.lt.s32.totalorder %s328_s7, %s1201_s25 }
  0x39   : > { %p1199_p1 = pneg %p1198_p5  ;;  %p1204_p6 = scmp.lt.s32.totalorder %s1202_s13, %s1195_s18 }
  0x3b   : > { %p1205_p7 = por %p1204_p6, %p1203_p2 }
  0x3d   : > { %p1206_p10 = pnand %p1205_p7, %p1199_p1 }
  0x3f   : > { %1209 = shalt.err (!%p1206_p10)
}
  0x40   : > { %1059 = dma.hbm_to_vmem [thread:$0]  (!%p1504_p0), %s325_s26, 128, %s328_s7, %s1551_s8  }
  0x41   : > { %s1896_s0 = sld [smem:[#allocation23_spill]]  ;;  %s245_s17 = scalar_lea.vmem [#allocation2], %s1497_s10 }
  0x42   : > { %s254_s16 = sshll.u32 %s245_s17, 4  ;;  %s242_s25 = scalar_lea.sflag [#allocation3], %s1494_s9  ;;  %s255_s16 = int_to_ptr.vmem [resolvable:$true] %s254_s16 }
  0x43   : > { %s1223_s18 = scalar_lea.vmem %s255_s16, 256  ;;  %s1388_s13 = smov [#allocation2]  }
  0x44   : > { %p1224_p13 = scmp.ne.s32.totalorder %s255_s16, %s1223_s18  ;;  %s1228_s14 = sshll.u32 %s1388_s13, 4  ;;  %s1229_s14 = int_to_ptr.vmem [resolvable:$false] %s1228_s14 }
  0x45   : > { %s1230_s1 = scalar_lea.vmem %s1229_s14, 512  ;;  %p1231_p1 = scmp.lt.s32.totalorder %s255_s16, %s1229_s14 }
  0x46   : > { %p1226_p12 = pnand %p1224_p13, %p1522_p3  ;;  %p1232_p2 = scmp.lt.s32.totalorder %s1230_s1, %s1223_s18 }
  0x47   : > { %s253_s15 = scalar_lea.hbm %s1896_s0, %s1500_s11 }
  0x48   : > { %p1227_p5 = pneg %p1226_p12  ;;  %p1233_p6 = por %p1232_p2, %p1231_p1 }
  0x4a   : > { %p1234_p7 = pnand %p1233_p6, %p1227_p5 }
  0x4c   : > { %1237 = shalt.err (!%p1234_p7)
}
  0x4d   : > { %s1897_s26 = smov 8   ;;  %s1898_s7 = smov 128  }
  0x4e   : > { %1050 = dma.hbm_to_vmem [thread:$0]  (!%p1504_p0), %s253_s15, 256, %s255_s16, %s242_s25, %s1898_s7, %s1898_s7, %s1897_s26  }
  0x4f   : > { %s299_s17 = scalar_lea.hbm %s1857_s2, %s1500_s11  ;;  %s291_s13 = scalar_lea.vmem [#allocation7], %s1497_s10 }
  0x50   : > { %s300_s14 = sshll.u32 %s291_s13, 4  ;;  %s349_s0 = scalar_lea.hbm %s1859_s4, %s1500_s11  ;;  %s301_s14 = int_to_ptr.vmem [resolvable:$true] %s300_s14 }
  0x51   : > { %s1251_s3 = scalar_lea.vmem %s301_s14, 256  ;;  %s1389_s23 = smov [#allocation7]  }
  0x52   : > { %p1252_p10 = scmp.ne.s32.totalorder %s301_s14, %s1251_s3  ;;  %s1256_s5 = sshll.u32 %s1389_s23, 4  ;;  %s1257_s5 = int_to_ptr.vmem [resolvable:$false] %s1256_s5 }
  0x53   : > { %s1258_s15 = scalar_lea.vmem %s1257_s5, 512  ;;  %p1259_p5 = scmp.lt.s32.totalorder %s301_s14, %s1257_s5 }
  0x54   : > { %p1254_p13 = pnand %p1252_p10, %p1522_p3  ;;  %p1260_p1 = scmp.lt.s32.totalorder %s1258_s15, %s1251_s3 }
  0x56   : > { %p1255_p12 = pneg %p1254_p13  ;;  %p1261_p2 = por %p1260_p1, %p1259_p5 }
  0x58   : > { %p1262_p6 = pnand %p1261_p2, %p1255_p12 }
  0x5a   : > { %1265 = shalt.err (!%p1262_p6)
}
  0x5b   : > { %1056 = dma.hbm_to_vmem [thread:$0]  (!%p1504_p0), %s299_s17, 256, %s301_s14, %s1518_s27, %s1898_s7, %s1898_s7, %s1897_s26  }
  0x5c   : > { %s1899_s10 = sshll.u32 %s1494_s9, 3  ;;  %s1390_s3 = smov [#allocation10]  }
  0x5d   : > { %s338_s16 = scalar_lea.vmem [#allocation10], %s1899_s10  ;;  %s1284_s5 = sshll.u32 %s1390_s3, 4  ;;  %s1285_s5 = int_to_ptr.vmem [resolvable:$false] %s1284_s5 }
  0x5e   : > { %s351_s25 = sshll.u32 %s338_s16, 4  ;;  %s1286_s20 = scalar_lea.vmem %s1285_s5, 256  ;;  %s352_s25 = int_to_ptr.vmem [resolvable:$true] %s351_s25 }
  0x5f   : > { %s1279_s23 = scalar_lea.vmem %s352_s25, 128  ;;  %p1287_p12 = scmp.lt.s32.totalorder %s352_s25, %s1285_s5 }
  0x60   : > { %p1280_p7 = scmp.ne.s32.totalorder %s352_s25, %s1279_s23  ;;  %p1288_p5 = scmp.lt.s32.totalorder %s1286_s20, %s1279_s23 }
  0x62   : > { %p1282_p10 = pnand %p1280_p7, %p1522_p3  ;;  %p1289_p1 = por %p1288_p5, %p1287_p12 }
  0x64   : > { %p1283_p13 = pneg %p1282_p10 }
  0x66   : > { %p1290_p2 = pnand %p1289_p1, %p1283_p13 }
  0x68   : > { %1293 = shalt.err (!%p1290_p2)
}
  0x69   : > { %1062 = dma.hbm_to_vmem [thread:$0]  (!%p1504_p0), %s349_s0, 128, %s352_s25, %s1551_s8  }
  0x6a   : > { %360 = sbr.rel (%p1538_p4) target bundleno = 535 (0x217), region = 40  ;;  %s1603_s28 = sand.u32 (!%p1538_p4), 1, %s1366_s19  }
  0x6b   : > { %s993_s26 = sshll.u32 (!%p1538_p4), %s1603_s28, 4  ;;  %s363_s7 = scalar_lea.sflag (!%p1538_p4), [#allocation3], %s1603_s28 }
  0x6c   : > { %s366_s22 = scalar_lea.vmem (!%p1538_p4), [#allocation2], %s993_s26 }
  0x6f   : > { %1345 = dma.done.wait (%p1476_p8), %s363_s7, 256  }
  0x70   : > { %1347 = vsyncadd (%p1476_p8), %s363_s7, 4294967040  ;;  %s371_s0 = sand.u32 1, %s1456_s24   ;;  %s375_s11 = scalar_lea.vmem [#allocation5], %s993_s26 }
  0x71   : > { %s372_s8 = scalar_lea.sflag [#allocation6], %s371_s0 }
  0x72   : > { %1349 = dma.done.wait (%p1476_p8), %s372_s8, 512  }
  0x73   : > { %1351 = vsyncadd (%p1476_p8), %s372_s8, 4294966784  ;;  %s1617_s12 = sshll.u32 %s1603_s28, 3  ;;  %s384_s29 = scalar_lea.vmem [#allocation7], %s993_s26 }
  0x74   : > { %s390_s17 = scalar_lea.sflag [#allocation9], %s371_s0  ;;  %s393_s13 = scalar_lea.vmem [#allocation8], %s1617_s12 }
  0x75   : > { %1353 = dma.done.wait (%p1476_p8), %s390_s17, 256  }
  0x76   : > { %1355 = vsyncadd (%p1476_p8), %s390_s17, 4294967040  ;;  %v1624_v0 = vld [vmem:[%s366_s22 + $0x8] sm:$0xff]  ;;  %v1626_v1 = vld [vmem:[%s366_s22] sm:$0xff]  ;;  %s1391_s24 = smov 1   ;;  %v460_v32 = vlaneseq  ;;  %s402_s30 = scalar_lea.vmem [#allocation10], %s1617_s12  ;;  %vm1392_vm3 = vmmov 1  }
  0x77   : > { %608 = vrot.lane.b32.xlu1 %v1624_v0, %s1391_s24  ;;  %488 = vrot.lane.b32.xlu0 %v1626_v1, %s1391_s24  ;;  %v1630_v2 = vld [vmem:[%s375_s11 + $0x8] sm:$0xff]  ;;  %v1632_v3 = vld [vmem:[%s375_s11] sm:$0xff]  ;;  %v470_v5 = vadd.f32 1e-07, %v1626_v1  ;;  %v590_v10 = vadd.f32 1e-07, %v1624_v0 }
  0x78   : > { %v467_v4 = vld [vmem:[%s384_s29] sm:$0xff]  ;;  %v473_v6 = vadd.f32 1e-07, %v1632_v3  ;;  %v1007_v7 = vld [vmem:[%s384_s29 + $0x8] sm:$0xff]  ;;  %v593_v11 = vadd.f32 1e-07, %v1630_v2 }
  0x79   : > { %1122 = vlog2.f32 %v470_v5  ;;  %v468_v8 = vmin.f32 %v467_v4, 1.0  ;;  %v588_v9 = vmin.f32 %v1007_v7, 1.0  ;;  %v461_v33 = vshrl.u32 %v460_v32, 7  ;;  %v463_v34 = vld [vmem:[%s393_s13] sm:$0xff]  ;;  %v464_v35 = vld [vmem:[%s402_s30] sm:$0xff]  ;;  %s1015_s25 = sshll.u32 %s1374_s21, 7 }
  0x7a   : > { %1124 = vlog2.f32 %v473_v6  ;;  %v603_v36 = vrot.slane %v1624_v0, 7  ;;  %v483_v37 = vrot.slane %v1626_v1, 7  ;;  %v482_v38 = vrot.slane %v463_v34, 7  ;;  %s448_s23 = scalar_lea.vmem [#allocation11], %s1617_s12  ;;  %s1912_s9 = sld [smem:[#allocation26_spill]] }
  0x7b   : > { %611 = vrot.lane.b32.xlu1 %v1630_v2, %s1391_s24  ;;  %491 = vrot.lane.b32.xlu0 %v1632_v3, %s1391_s24  ;;  %v1640_v12 = vsub.f32 %v467_v4, %v468_v8  ;;  %1126 = vlog2.f32 %v590_v10  ;;  %v1642_v13 = vsub.f32 %v1007_v7, %v588_v9  ;;  %v601_v30 = vadd.f32 %v588_v9, %v468_v8  ;;  %s793_s3 = sshll.u32 %s448_s23, 4  ;;  %s779_s26 = scalar_lea.sflag [#allocation4], %s1603_s28  ;;  %s794_s3 = int_to_ptr.vmem [resolvable:$true] %s793_s3 }
  0x7c   : > { %1128 = vlog2.f32 %v593_v11  ;;  %v606_v39 = vrot.slane %v1630_v2, 7  ;;  %v486_v40 = vrot.slane %v1632_v3, 7  ;;  %vm462_vm0 = vcmp.eq.s32.totalorder %v461_v33, 0  ;;  %s1294_s7 = scalar_lea.vmem %s794_s3, 128  ;;  %s1394_s22 = smov [#allocation11]  }
  0x7d   : > { %v1646_v15 = vadd.f32 %v1642_v13, %v1640_v12  ;;  %v485_v41 = vrot.slane %v464_v35, 7  ;;  %v604_v42 = vsel %vm462_vm0, %v483_v37, %v603_v36  ;;  %v484_v43 = vsel %vm462_vm0, %v482_v38, %v483_v37  ;;  %p1295_p8 = scmp.ne.s32.totalorder %s794_s3, %s1294_s7  ;;  %s1298_s0 = sshll.u32 %s1394_s22, 4  ;;  %s1299_s0 = int_to_ptr.vmem [resolvable:$false] %s1298_s0 }
  0x7e   : > { %v607_v44 = vsel %vm462_vm0, %v486_v40, %v606_v39  ;;  %v614_v47 = vsub.f32 %v1624_v0, %v604_v42  ;;  %v494_v49 = vsub.f32 %v1626_v1, %v484_v43  ;;  %s1300_s21 = scalar_lea.vmem %s1299_s0, 256  ;;  %p1301_p4 = scmp.lt.s32.totalorder %s794_s3, %s1299_s0 }
  0x7f   : > { %v487_v45 = vsel %vm462_vm0, %v485_v41, %v486_v40  ;;  %v615_v52 = vsub.f32 %v1630_v2, %v607_v44  ;;  %p1296_p0 = pnand %p1295_p8, %p1480_p9  ;;  %p1302_p6 = scmp.lt.s32.totalorder %s1300_s21, %s1294_s7 }
  0x80   : > { %v495_v53 = vsub.f32 %v1632_v3, %v487_v45  ;;  %v617_v56 = vmul.f32 %v614_v47, %v614_v47  ;;  %v497_v57 = vmul.f32 %v494_v49, %v494_v49  ;;  %s791_s27 = scalar_lea.hbm %s1912_s9, %s1015_s25 }
  0x81   : > { %v620_v62 = vmul.f32 %v615_v52, %v615_v52  ;;  %p1297_p3 = pneg %p1296_p0  ;;  %p1303_p7 = por %p1302_p6, %p1301_p4 }
  0x83   : > { %p1304_p10 = pnand %p1303_p7, %p1297_p3 }
  0x86   : > { %v1123_v14 = vpop.eup %1122 }
  0x87   : > { %v1125_v16 = vpop.eup %1124  ;;  %v472_v17 = vmul.f32 0.6931472, %v1123_v14 }
  0x88   : > { %v475_v18 = vmul.f32 0.6931472, %v1125_v16  ;;  %v1127_v19 = vpop.eup %1126 }
  0x89   : > { %v1129_v20 = vpop.eup %1128  ;;  %v592_v21 = vmul.f32 0.6931472, %v1127_v19 }
  0x8a   : > { %v595_v22 = vmul.f32 0.6931472, %v1129_v20  ;;  %v476_v23 = vsub.f32 %v472_v17, %v475_v18 }
  0x8c   : > { %v596_v24 = vsub.f32 %v592_v21, %v595_v22  ;;  %v477_v25 = vmul.f32 %v476_v23, %v468_v8 }
  0x8e   : > { %v597_v26 = vmul.f32 %v596_v24, %v588_v9  ;;  %v479_v28 = vmul.f32 %v477_v25, %v477_v25 }
  0x90   : > { %v598_v27 = vadd.f32 %v597_v26, %v477_v25  ;;  %v599_v29 = vmul.f32 %v597_v26, %v597_v26 }
  0x92   : > { %v600_v31 = vadd.f32 %v599_v29, %v479_v28 }
  0x9a   : > { %700 = vadd.xlane.f32.xlu0 %v598_v27 }
  0x9e   : > { %726 = vadd.xlane.f32.xlu0 %v601_v30 }
  0x9f   : > { %713 = vadd.xlane.f32.xlu1 %v600_v31 }
  0xe9   : > { %v609_v46 = vpop.permute.xlu1 %608  ;;  %v489_v48 = vpop.permute.xlu0 %488 }
  0xea   : > { %v610_v50 = vsub.f32 %v1624_v0, %v609_v46  ;;  %v490_v51 = vsub.f32 %v1626_v1, %v489_v48  ;;  %v500_v1 = vmul.f32 %v495_v53, %v495_v53 }
  0xec   : > { %v622_v54 = vadd.f32 1e-10, %v610_v50  ;;  %v502_v55 = vadd.f32 1e-10, %v490_v51  ;;  %v616_v60 = vmul.f32 %v610_v50, %v610_v50  ;;  %v496_v63 = vmul.f32 %v490_v51, %v490_v51 }
  0xed   : > { %v612_v58 = vpop.permute.xlu1 %611  ;;  %v492_v59 = vpop.permute.xlu0 %491 }
  0xee   : > { %1130 = vrcp.f32 %v622_v54  ;;  %v613_v61 = vsub.f32 %v1630_v2, %v612_v58  ;;  %v493_v0 = vsub.f32 %v1632_v3, %v492_v59  ;;  %v618_v8 = vadd.f32 %v617_v56, %v616_v60 }
  0xef   : > { %1132 = vrcp.f32 %v502_v55  ;;  %v498_v10 = vadd.f32 %v497_v57, %v496_v63 }
  0xf0   : > { %v619_v4 = vmul.f32 %v613_v61, %v613_v61  ;;  %v655_v5 = vadd.f32 1e-10, %v613_v61  ;;  %v499_v6 = vmul.f32 %v493_v0, %v493_v0  ;;  %v535_v7 = vadd.f32 1e-10, %v493_v0 }
  0xf2   : > { %v621_v9 = vadd.f32 %v620_v62, %v619_v4  ;;  %1134 = vrcp.f32 %v655_v5  ;;  %v501_v11 = vadd.f32 %v500_v1, %v499_v6 }
  0xf3   : > { %1136 = vrcp.f32 %v535_v7 }
  0xf4   : > { %v688_v14 = vsub.f32 %v618_v8, %v621_v9  ;;  %v568_v16 = vsub.f32 %v498_v10, %v501_v11 }
  0xf6   : > { %v689_v17 = vand.u32 2147483647, %v688_v14  ;;  %v569_v2 = vand.u32 2147483647, %v568_v16 }
  0xf8   : > { %v690_v18 = vmul.f32 %v689_v17, %v1642_v13  ;;  %v570_v19 = vmul.f32 %v569_v2, %v1640_v12 }
  0xfa   : > { %v691_v20 = vadd.f32 %v690_v18, %v570_v19 }
  0xfb   : > { %v1131_v3 = vpop.eup %1130 }
  0xfc   : > { %v1133_v21 = vpop.eup %1132  ;;  %v1666_v22 = vmul.f32 %v1131_v3, %v614_v47  ;;  %739 = vadd.xlane.f32.xlu0 %v691_v20 }
  0xfd   : > { %v1668_v23 = vmul.f32 %v1133_v21, %v494_v49 }
  0xfe   : > { %v1671_v24 = vand.u32 2147483647, %v1666_v22 }
  0xff   : > { %v1135_v25 = vpop.eup %1134  ;;  %v1674_v26 = vand.u32 2147483647, %v1668_v23 }
 0x100   : > { %v1137_v27 = vpop.eup %1136  ;;  %v632_v28 = vadd.f32 1.0, %v1671_v24  ;;  %v1677_v29 = vmul.f32 %v1135_v25, %v615_v52  ;;  %765 = vadd.xlane.f32.xlu0 %v1646_v15  ;;  %v630_v38 = vadd.f32 1e-10, %v1671_v24  ;;  %vm626_vm2 = vcmp.gt.f32.partialorder %v1671_v24, 2.4142137 }
 0x101   : > { %v512_v30 = vadd.f32 1.0, %v1674_v26  ;;  %v1680_v31 = vmul.f32 %v1137_v27, %v495_v53  ;;  %v510_v34 = vadd.f32 1e-10, %v1674_v26  ;;  %vm506_vm1 = vcmp.gt.f32.partialorder %v1674_v26, 2.4142137  ;;  %vm1706_vm7 = vmxor %vm626_vm2, %vm1392_vm3 }
 0x102   : > { %1138 = vrcp.f32 %v632_v28  ;;  %v1684_v33 = vand.u32 2147483647, %v1677_v29  ;;  %vm507_vm4 = vmxor %vm506_vm1, %vm1392_vm3  ;;  %vm508_vm5 = vcmp.gt.f32.partialorder %v1674_v26, 0.41421357  ;;  %v999_v41 = vadd.f32 -1.0, %v1674_v26 }
 0x103   : > { %1140 = vrcp.f32 %v512_v30  ;;  %v1688_v35 = vand.u32 2147483647, %v1680_v31  ;;  %v1008_v44 = vadd.f32 -1.0, %v1671_v24  ;;  %vm1712_vm9 = vmand %vm507_vm4, %vm508_vm5  ;;  %vm628_vm10 = vcmp.gt.f32.partialorder %v1671_v24, 0.41421357 }
 0x104   : > { %v665_v36 = vadd.f32 1.0, %v1684_v33  ;;  %1142 = vrcp.f32 %v510_v34  ;;  %v663_v39 = vadd.f32 1e-10, %v1684_v33  ;;  %vm659_vm8 = vcmp.gt.f32.partialorder %v1684_v33, 2.4142137  ;;  %vm1740_vm15 = vmand %vm1706_vm7, %vm628_vm10 }
 0x105   : > { %v545_v37 = vadd.f32 1.0, %v1688_v35  ;;  %v543_v15 = vadd.f32 1e-10, %v1688_v35  ;;  %vm539_vm6 = vcmp.gt.f32.partialorder %v1688_v35, 2.4142137  ;;  %v1011_v51 = vadd.f32 -1.0, %v1684_v33  ;;  %vm660_vm13 = vmxor %vm659_vm8, %vm1392_vm3 }
 0x106   : > { %1144 = vrcp.f32 %v665_v36  ;;  %vm1720_vm11 = vmxor %vm539_vm6, %vm1392_vm3  ;;  %vm541_vm12 = vcmp.gt.f32.partialorder %v1688_v35, 0.41421357  ;;  %v1002_v54 = vadd.f32 -1.0, %v1688_v35  ;;  %vm661_vm14 = vcmp.gt.f32.partialorder %v1684_v33, 0.41421357 }
 0x107   : > { %1146 = vrcp.f32 %v545_v37  ;;  %vm1748_vm0 = vmand %vm1720_vm11, %vm541_vm12  ;;  %vm652_vm4 = vcmp.lt.f32.partialorder %v1666_v22, 0.0  ;;  %vm685_vm5 = vcmp.lt.f32.partialorder %v1677_v29, 0.0 }
 0x108   : > { %1148 = vrcp.f32 %v543_v15  ;;  %vm1755_vm3 = vmand %vm660_vm13, %vm661_vm14 }
 0x109   : > { %1150 = vrcp.f32 %v630_v38 }
 0x10a   : > { %1152 = vrcp.f32 %v663_v39 }
 0x10f   : > { %v1139_v40 = vpop.eup %1138 }
 0x110   : > { %v1141_v42 = vpop.eup %1140  ;;  %v636_v50 = vmul.f32 %v1139_v40, %v1008_v44 }
 0x111   : > { %v1143_v45 = vpop.eup %1142  ;;  %v516_v47 = vmul.f32 %v1141_v42, %v999_v41  ;;  %v1393_v42 = vmov 0.0  }
 0x112   : > { %v514_v48 = vsub.f32 0.0, %v1143_v45  ;;  %v637_v1 = vsel %vm1740_vm15, %v636_v50, %v1671_v24  ;;  %v519_v43 = vsel %vm1712_vm9, 0.7853982, %v1393_v42 }
 0x113   : > { %v1145_v52 = vpop.eup %1144  ;;  %v517_v53 = vsel %vm1712_vm9, %v516_v47, %v1674_v26 }
 0x114   : > { %v1147_v55 = vpop.eup %1146  ;;  %v1736_v56 = vsel %vm506_vm1, %v514_v48, %v517_v53  ;;  %v669_v58 = vmul.f32 %v1145_v52, %v1011_v51 }
 0x115   : > { %v1149_v59 = vpop.eup %1148  ;;  %v521_v60 = vmul.f32 %v1736_v56, %v1736_v56  ;;  %v549_v62 = vmul.f32 %v1147_v55, %v1002_v54  ;;  %v520_v54 = vsel %vm506_vm1, 1.5707964, %v519_v43  ;;  %v639_v55 = vsel %vm1740_vm15, 0.7853982, %v1393_v42 }
 0x116   : > { %v1151_v63 = vpop.eup %1150  ;;  %v547_v0 = vsub.f32 0.0, %v1149_v59  ;;  %v670_v9 = vsel %vm1755_vm3, %v669_v58, %v1684_v33  ;;  %v640_v4 = vsel %vm626_vm2, 1.5707964, %v639_v55  ;;  %vm532_vm1 = vcmp.lt.f32.partialorder %v1668_v23, 0.0 }
 0x117   : > { %v1153_v5 = vpop.eup %1152  ;;  %v522_v6 = vmul.f32 0.080537446, %v521_v60  ;;  %v550_v7 = vsel %vm1748_vm0, %v549_v62, %v1688_v35  ;;  %v634_v8 = vsub.f32 0.0, %v1151_v63 }
 0x118   : > { %v1767_v10 = vsel %vm539_vm6, %v547_v0, %v550_v7  ;;  %v667_v11 = vsub.f32 0.0, %v1153_v5  ;;  %v672_v5 = vsel %vm1755_vm3, 0.7853982, %v1393_v42 }
 0x119   : > { %v1000_v14 = vadd.f32 -0.13877685, %v522_v6  ;;  %v554_v16 = vmul.f32 %v1767_v10, %v1767_v10  ;;  %v1773_v17 = vsel %vm626_vm2, %v634_v8, %v637_v1  ;;  %vm565_vm2 = vcmp.lt.f32.partialorder %v1680_v31, 0.0 }
 0x11a   : > { %v641_v2 = vmul.f32 %v1773_v17, %v1773_v17  ;;  %v1779_v18 = vsel %vm659_vm8, %v667_v11, %v670_v9 }
 0x11b   : > { %v524_v19 = vmul.f32 %v1000_v14, %v521_v60  ;;  %v555_v3 = vmul.f32 0.080537446, %v554_v16  ;;  %v674_v20 = vmul.f32 %v1779_v18, %v1779_v18 }
 0x11c   : > { %v642_v21 = vmul.f32 0.080537446, %v641_v2 }
 0x11d   : > { %v525_v25 = vadd.f32 0.19977711, %v524_v19  ;;  %v1003_v27 = vadd.f32 -0.13877685, %v555_v3  ;;  %v675_v28 = vmul.f32 0.080537446, %v674_v20 }
 0x11e   : > { %v1009_v30 = vadd.f32 -0.13877685, %v642_v21 }
 0x11f   : > { %v526_v34 = vmul.f32 %v525_v25, %v521_v60  ;;  %v557_v36 = vmul.f32 %v1003_v27, %v554_v16  ;;  %v1012_v37 = vadd.f32 -0.13877685, %v675_v28 }
 0x120   : > { %v644_v38 = vmul.f32 %v1009_v30, %v641_v2 }
 0x121   : > { %v1001_v15 = vadd.f32 -0.3333295, %v526_v34  ;;  %v558_v39 = vadd.f32 0.19977711, %v557_v36  ;;  %v677_v40 = vmul.f32 %v1012_v37, %v674_v20 }
 0x122   : > { %v645_v41 = vadd.f32 0.19977711, %v644_v38 }
 0x123   : > { %v528_v44 = vmul.f32 %v1001_v15, %v521_v60  ;;  %v559_v45 = vmul.f32 %v558_v39, %v554_v16  ;;  %v678_v47 = vadd.f32 0.19977711, %v677_v40  ;;  %v701_v48 = vpop.xlane.xlu0 %700  ;;  %v552_v60 = vsel %vm1748_vm0, 0.7853982, %v1393_v42 }
 0x124   : > { %v646_v49 = vmul.f32 %v645_v41, %v641_v2  ;;  %v702_v50 = vrot.slane %v701_v48, 4  ;;  %v553_v61 = vsel %vm539_vm6, 1.5707964, %v552_v60 }
 0x125   : > { %v529_v51 = vmul.f32 %v528_v44, %v1736_v56  ;;  %v1004_v52 = vadd.f32 -0.3333295, %v559_v45  ;;  %v679_v53 = vmul.f32 %v678_v47, %v674_v20 }
 0x126   : > { %v1010_v58 = vadd.f32 -0.3333295, %v646_v49  ;;  %v703_v59 = vadd.f32 %v702_v50, %v701_v48 }
 0x127   : > { %v530_v46 = vadd.f32 %v529_v51, %v520_v54  ;;  %v561_v62 = vmul.f32 %v1004_v52, %v554_v16  ;;  %v1013_v63 = vadd.f32 -0.3333295, %v679_v53  ;;  %v727_v0 = vpop.xlane.xlu0 %726 }
 0x128   : > { %v648_v1 = vmul.f32 %v1010_v58, %v641_v2  ;;  %v704_v6 = vrot.slane %v703_v59, 2  ;;  %v728_v7 = vrot.slane %v727_v0, 4  ;;  %v714_v26 = vpop.xlane.xlu1 %713 }
 0x129   : > { %v531_v8 = vadd.f32 %v530_v46, %v1736_v56  ;;  %v562_v57 = vmul.f32 %v561_v62, %v1767_v10  ;;  %v681_v9 = vmul.f32 %v1013_v63, %v674_v20  ;;  %v715_v11 = vrot.slane %v714_v26, 4 }
 0x12a   : > { %v649_v14 = vmul.f32 %v648_v1, %v1773_v17  ;;  %v729_v16 = vadd.f32 %v728_v7, %v727_v0  ;;  %v705_v19 = vadd.f32 %v704_v6, %v703_v59  ;;  %v673_v56 = vsel %vm659_vm8, 1.5707964, %v672_v5 }
 0x12b   : > { %v563_v2 = vadd.f32 %v562_v57, %v553_v61  ;;  %v682_v3 = vmul.f32 %v681_v9, %v1779_v18  ;;  %v716_v21 = vadd.f32 %v715_v11, %v714_v26  ;;  %v533_v28 = vsub.f32 0.0, %v531_v8 }
 0x12c   : > { %v650_v25 = vadd.f32 %v649_v14, %v640_v4  ;;  %v730_v20 = vrot.slane %v729_v16, 2  ;;  %v706_v27 = vrot.slane %v705_v19, 1  ;;  %v698_v57 = vand.u32 127, %v460_v32 }
 0x12d   : > { %v564_v35 = vadd.f32 %v563_v2, %v1767_v10  ;;  %v683_v30 = vadd.f32 %v682_v3, %v673_v56  ;;  %v717_v34 = vrot.slane %v716_v21, 2  ;;  %v534_v41 = vsel %vm532_vm1, %v533_v28, %v531_v8 }
 0x12e   : > { %v651_v36 = vadd.f32 %v650_v25, %v1773_v17  ;;  %v707_v37 = vadd.f32 %v706_v27, %v705_v19  ;;  %v731_v38 = vadd.f32 %v730_v20, %v729_v16  ;;  %vm699_vm6 = vcmp.eq.s32.totalorder %v698_v57, 0 }
 0x12f   : > { %v566_v24 = vsub.f32 0.0, %v564_v35  ;;  %v684_v15 = vadd.f32 %v683_v30, %v1779_v18  ;;  %v718_v39 = vadd.f32 %v717_v34, %v716_v21  ;;  %vm712_vm7 = vcmp.eq.s32.totalorder %v698_v57, 1 }
 0x130   : > { %v653_v33 = vsub.f32 0.0, %v651_v36  ;;  %1023 = vpush %v707_v37  ;;  %v732_v40 = vrot.slane %v731_v38, 1  ;;  %vm725_vm8 = vcmp.eq.s32.totalorder %v698_v57, 2  ;;  %vm738_vm9 = vcmp.eq.s32.totalorder %v698_v57, 3 }
 0x131   : > { %v567_v42 = vsel %vm565_vm2, %v566_v24, %v564_v35  ;;  %v686_v10 = vsub.f32 0.0, %v684_v15  ;;  %v719_v43 = vrot.slane %v718_v39, 1  ;;  %vm751_vm10 = vcmp.eq.s32.totalorder %v698_v57, 4 }
 0x132   : > { %v572_v44 = vsub.f32 %v534_v41, %v567_v42  ;;  %v733_v17 = vadd.f32 %v732_v40, %v731_v38  ;;  %v654_v45 = vsel %vm652_vm4, %v653_v33, %v651_v36  ;;  %vm764_vm11 = vcmp.eq.s32.totalorder %v698_v57, 5 }
 0x133   : > { %v687_v18 = vsel %vm685_vm5, %v686_v10, %v684_v15  ;;  %v720_v47 = vadd.f32 %v719_v43, %v718_v39 }
 0x134   : > { %v573_v48 = vand.u32 2147483647, %v572_v44  ;;  %v692_v23 = vsub.f32 %v654_v45, %v687_v18 }
 0x135   : > { %1025 = vpush %v720_v47 }
 0x136   : > { %v574_v31 = vmul.f32 %v573_v48, %v1640_v12  ;;  %v693_v49 = vand.u32 2147483647, %v692_v23  ;;  %1027 = vpush %v733_v17 }
 0x138   : > { %v694_v50 = vmul.f32 %v693_v49, %v1642_v13 }
 0x13a   : > { %v695_v51 = vadd.f32 %v694_v50, %v574_v31 }
 0x13c   : > { %752 = vadd.xlane.f32.xlu1 %v695_v51 }
 0x161   : > { %s1024_s14 = spop %1023 }
 0x162   : > { %v709_v9 = vstv %s1024_s14 }
 0x163   : > { %v710_v61 = vsel %vm699_vm6, %v709_v9, 0.0 }
 0x166   : > { %s1026_s1 = spop %1025 }
 0x167   : > { %v722_v11 = vstv %s1026_s1  ;;  %s1028_s18 = spop %1027 }
 0x168   : > { %v723_v14 = vsel %vm712_vm7, %v722_v11, 0.0  ;;  %v735_v16 = vstv %s1028_s18 }
 0x169   : > { %v724_v19 = vadd.f32 %v723_v14, %v710_v61  ;;  %v736_v2 = vsel %vm725_vm8, %v735_v16, 0.0 }
 0x16b   : > { %v737_v3 = vadd.f32 %v736_v2, %v724_v19 }
 0x185   : > { %v740_v52 = vpop.xlane.xlu0 %739 }
 0x186   : > { %v741_v53 = vrot.slane %v740_v52, 4 }
 0x188   : > { %v742_v22 = vadd.f32 %v741_v53, %v740_v52 }
 0x189   : > { %v766_v59 = vpop.xlane.xlu0 %765 }
 0x18a   : > { %v743_v54 = vrot.slane %v742_v22, 2  ;;  %v767_v46 = vrot.slane %v766_v59, 4 }
 0x18c   : > { %v744_v29 = vadd.f32 %v743_v54, %v742_v22  ;;  %v768_v60 = vadd.f32 %v767_v46, %v766_v59 }
 0x18e   : > { %v745_v55 = vrot.slane %v744_v29, 1  ;;  %v769_v62 = vrot.slane %v768_v60, 2 }
 0x190   : > { %v746_v58 = vadd.f32 %v745_v55, %v744_v29  ;;  %v770_v1 = vadd.f32 %v769_v62, %v768_v60 }
 0x192   : > { %1029 = vpush %v746_v58  ;;  %v771_v6 = vrot.slane %v770_v1, 1 }
 0x194   : > { %v772_v8 = vadd.f32 %v771_v6, %v770_v1 }
 0x1c3   : > { %s1030_s15 = spop %1029 }
 0x1c4   : > { %v748_v4 = vstv %s1030_s15 }
 0x1c5   : > { %v753_v63 = vpop.xlane.xlu1 %752  ;;  %v749_v21 = vsel %vm738_vm9, %v748_v4, 0.0 }
 0x1c6   : > { %v754_v12 = vrot.slane %v753_v63, 4  ;;  %v750_v32 = vadd.f32 %v749_v21, %v737_v3 }
 0x1c8   : > { %v755_v0 = vadd.f32 %v754_v12, %v753_v63 }
 0x1ca   : > { %v756_v5 = vrot.slane %v755_v0, 2 }
 0x1cc   : > { %v757_v13 = vadd.f32 %v756_v5, %v755_v0 }
 0x1ce   : > { %v758_v7 = vrot.slane %v757_v13, 1 }
 0x1d0   : > { %v759_v26 = vadd.f32 %v758_v7, %v757_v13 }
 0x1d2   : > { %1031 = vpush %v759_v26 }
 0x1d3   : > { %1033 = vpush %v772_v8 }
 0x203   : > { %s1032_s10 = spop %1031 }
 0x204   : > { %v761_v25 = vstv %s1032_s10  ;;  %s1034_s16 = spop %1033 }
 0x205   : > { %v762_v56 = vsel %vm751_vm10, %v761_v25, 0.0  ;;  %v774_v20 = vstv %s1034_s16 }
 0x206   : > { %v763_v27 = vadd.f32 %v762_v56, %v750_v32  ;;  %v775_v28 = vsel %vm764_vm11, %v774_v20, 0.0 }
 0x208   : > { %v776_v35 = vadd.f32 %v775_v28, %v763_v27 }
 0x20a   : > { %777 = vst [vmem:[%s448_s23] sm:$0xff] %v776_v35 }
 0x20b   : > { %1307 = shalt.err (!%p1304_p10)
}
 0x20c   : > { %s1308_s8 = scalar_lea.hbm %s791_s27, 128  ;;  %s1312_s12 = scalar_lea.hbm %s1912_s9, 256 }
 0x20d   : > { %p1309_p13 = scmp.ne.s32.totalorder %s791_s27, %s1308_s8  ;;  %p1313_p1 = scmp.lt.s32.totalorder %s791_s27, %s1912_s9 }
 0x20e   : > { %p1314_p2 = scmp.lt.s32.totalorder %s1312_s12, %s1308_s8 }
 0x20f   : > { %p1310_p12 = pnand %p1309_p13, %p1480_p9 }
 0x210   : > { %p1315_p8 = por %p1314_p2, %p1313_p1 }
 0x211   : > { %p1311_p5 = pneg %p1310_p12 }
 0x213   : > { %p1316_p0 = pnand %p1315_p8, %p1311_p5 }
 0x215   : > { %1319 = shalt.err (!%p1316_p0)
}
 0x216   : > { %1045 = dma.vmem_to_hbm [thread:$0]  (%p1480_p9), %s794_s3, 128, %s791_s27, %s779_s26  }
 0x217 PF: > { %s1913_s13 = sld [smem:[#allocation16_spill]] }
 0x218   : > { %s1915_s30 = sld [smem:[#allocation19_spill]] }
 0x21d   : > { %s805_s14 = sand.u32 1, %s1913_s13  }
 0x21e   : > { %p1916_p3 = scmp.ge.s32.totalorder %s1915_s30, 2  ;;  %s806_s1 = scalar_lea.sflag [#allocation4], %s805_s14 }
 0x220   : > { %p1064_p4 = pnand %p1916_p3, %p1487_p11 }
 0x222   : > { %p1065_p6 = pneg %p1064_p4 }
 0x224   : > { %1357 = dma.done.wait (%p1065_p6), %s806_s1, 128  }
 0x225   : > { %1359 = vsyncadd (%p1065_p6), %s806_s1, 4294967168  ;;  %s27_s23 = sadd.s32 1, %s1915_s30   ;;  %s1917_s15 = sld [smem:[#allocation17_spill]] }
 0x226   : > { %p24_p7 = scmp.ge.s32.totalorder %s27_s23, 4   ;;  %s1918_s20 = sld [smem:[#allocation21_spill]] }
 0x227   : > { %s1919_s21 = sld [smem:[#allocation18_spill]]  ;;  %s1921_s18 = smov %s1366_s19 }
 0x228   : > { %s1920_s22 = sld [smem:[#allocation20_spill]]  ;;  %26 = sbr.rel (!%p24_p7) target bundleno = 15 (0xf), region = 138 }
 0x22b   : > { %s1922_s19 = smov %s1917_s15 }
 0x22d   :  { %811 = vsyncpa [#allocation3], 1 }
 0x22e   :  { %813 = vsyncpa [#allocation3 + $0x1], 1 }
 0x22f   :  { %814 = vsyncpa [#allocation6], 1 }
 0x230   :  { %816 = vsyncpa [#allocation6 + $0x1], 1 }
 0x231   :  { %817 = vsyncpa [#allocation9], 1 }
 0x232   :  { %819 = vsyncpa [#allocation9 + $0x1], 1 }
 0x233   :  { %820 = vsyncpa [#allocation4], 1 }
 0x234   :  { %822 = vsyncpa [#allocation4 + $0x1], 1 }

</bundles_post_ra>
